<compile_context>
chip_gen: v6e
topology: v6e:2x2x1
jax: 0.10.0
libtpu: 0.0.40
codegen_flags: <defaults>
</compile_context>

<pallas_src>
import math

import jax
import jax.numpy as jnp
from jax.experimental import pallas as pl
from jax.experimental.pallas import tpu as pltpu

LANE = 128
OUT_ROWS = 16   # final-layer rows: 1 real row padded to a bf16 sublane tile


def _round_up(n, m):
    return ((n + m - 1) // m) * m


def _layer_sizes(input_size, hidden_size, hidden_layers, reduction_factor):
    """Replicates the size bookkeeping done in Discriminator.__init__."""
    sizes = [hidden_size]
    cur = hidden_size
    for _ in range(hidden_layers):
        cur = int(cur * reduction_factor)
        sizes.append(cur)
    return sizes


def _sigmoid_f32(z):
    # 1 / (1 + exp(-z)); the reciprocal goes to the EUP slot (approx vrcp).
    return pl.reciprocal(1.0 + jnp.exp(-z), approx=True)


def make_discriminator_kernel(num_hidden_linears):
    """Fused kernel: fc1+sigmoid, `num_hidden_linears` x (Linear+ReLU), fc_output+sigmoid.

    Transposed dataflow: every activation is (features_pad, tile_b)."""

    def kernel(*refs):
        # refs layout:
        #   x_ref (IN_PAD, TILE_B),
        #   w1_t, b1,
        #   [w_h0_t, b_h0, w_h1_t, b_h1, ...]   (num_hidden_linears pairs)
        #   w_out_t, b_out,
        #   o_ref (OUT_ROWS, TILE_B)
        x_ref = refs[0]
        w1_ref, b1_ref = refs[1], refs[2]
        hidden_refs = refs[3:3 + 2 * num_hidden_linears]
        w_out_ref = refs[3 + 2 * num_hidden_linears]
        b_out_ref = refs[4 + 2 * num_hidden_linears]
        o_ref = refs[-1]

        xt = x_ref[...]                                   # bf16 (IN_PAD, TILE_B)

        # fc1: z^T = W1^T @ x^T + b1  (MXU M=H1_PAD, K=IN_PAD, N=TILE_B, f32 acc)
        z = jnp.dot(w1_ref[...], xt, preferred_element_type=jnp.float32) + b1_ref[...]
        z = _sigmoid_f32(z)
        # Leading ReLU of the Sequential is identity after sigmoid -> dropped.

        # hidden Linear + ReLU stack
        for li in range(num_hidden_linears):
            w_ref = hidden_refs[2 * li]
            b_ref = hidden_refs[2 * li + 1]
            z = jnp.dot(w_ref[...], z.astype(jnp.bfloat16),
                        preferred_element_type=jnp.float32) + b_ref[...]
            z = jnp.maximum(z, 0.0)

        # fc_output + sigmoid: (OUT_ROWS, K_PAD) @ (K_PAD, TILE_B); row 0 is real.
        y = jnp.dot(w_out_ref[...], z.astype(jnp.bfloat16),
                    preferred_element_type=jnp.float32) + b_out_ref[...]
        y = _sigmoid_f32(y)

        o_ref[...] = y.astype(o_ref.dtype)

    return kernel


def _choose_tile_b(batch, requested):
    """Lane-aligned batch tile; never bigger than the batch; >=2 grid steps when possible."""
    aligned = _round_up(max(batch, 1), LANE)
    tile = min(_round_up(max(requested, LANE), LANE), aligned)
    # Give v7x's two TensorCores at least two grid steps when the batch spans
    # more than one 128-lane tile.
    if aligned // tile < 2 and aligned >= 2 * LANE:
        tile = max(LANE, _round_up(aligned // 2, LANE))
    return tile


def discriminator_forward(x, params, num_hidden_linears, tile_b=512):
    """x: [batch, input_size] f32.  params: flat [w1, b1, (w_hi, b_hi)*, w_out, b_out],
    unpadded f32, weights stored [in_features, out_features], biases [1, out_features]."""
    batch, input_size = x.shape

    weights = params[0::2]
    biases = params[1::2]
    n_layers = len(weights)
    assert n_layers == num_hidden_linears + 2

    # --- Transpose weights to [out, in], pad feature dims to lane multiples,
    #     cast weights to bf16; biases become padded [out_pad, 1] f32 columns.
    padded_params = []
    in_pads, out_pads = [], []
    for idx, (w, b) in enumerate(zip(weights, biases)):
        fan_in, fan_out = w.shape
        ip = _round_up(fan_in, LANE)
        op = OUT_ROWS if idx == n_layers - 1 else _round_up(fan_out, LANE)
        in_pads.append(ip)
        out_pads.append(op)
        wt = jnp.pad(w.T, ((0, op - fan_out), (0, ip - fan_in))).astype(jnp.bfloat16)
        bt = jnp.pad(b.reshape(fan_out, 1), ((0, op - fan_out), (0, 0))).astype(jnp.float32)
        padded_params.append(wt)
        padded_params.append(bt)

    in_pad0 = in_pads[0]
    tile = _choose_tile_b(batch, tile_b)
    padded_batch = _round_up(max(batch, 1), tile)
    n_tiles = padded_batch // tile

    # --- Activations laid out (features, batch): batch rides the MXU N axis and
    #     the output writeback is a small lane-dense slab.
    x_t = jnp.pad(x, ((0, padded_batch - batch), (0, in_pad0 - input_size)))
    x_t = x_t.T.astype(jnp.bfloat16)                    # (IN_PAD, padded_batch)

    kernel = make_discriminator_kernel(num_hidden_linears)
    inputs = [x_t] + padded_params

    weight_bytes = sum(int(p.size) * p.dtype.itemsize for p in padded_params)
    x_tile_bytes = in_pad0 * tile * 2
    out_tile_bytes = OUT_ROWS * tile * 4

    flops = 2 * padded_batch * sum(ip * op for ip, op in zip(in_pads, out_pads))
    transcendentals = padded_batch * (out_pads[0] + OUT_ROWS)      # exp in both sigmoids
    bytes_accessed = (int(x_t.size) * x_t.dtype.itemsize
                      + weight_bytes
                      + OUT_ROWS * padded_batch * 4)

    def _run(single_buffer_weights):
        in_specs = [pl.BlockSpec((in_pad0, tile), lambda i: (0, i))]
        for p in padded_params:
            if single_buffer_weights:
                # Constant block index -> resident in VMEM; one buffer suffices.
                spec = pl.BlockSpec(p.shape, lambda i: (0, 0),
                                    pipeline_mode=pl.Buffered(1))
            else:
                spec = pl.BlockSpec(p.shape, lambda i: (0, 0))
            in_specs.append(spec)
        out_spec = pl.BlockSpec((OUT_ROWS, tile), lambda i: (0, i))

        weight_mult = 1 if single_buffer_weights else 2
        need = weight_mult * weight_bytes + 2 * (x_tile_bytes + out_tile_bytes)
        vmem_limit = int(min(48 * 2**20, max(2 * need, 8 * 2**20)))

        return pl.pallas_call(
            kernel,
            out_shape=jax.ShapeDtypeStruct((OUT_ROWS, padded_batch), jnp.float32),
            grid_spec=pl.GridSpec(
                grid=(n_tiles,),
                in_specs=in_specs,
                out_specs=out_spec,
            ),
            compiler_params=pltpu.CompilerParams(
                dimension_semantics=("parallel",),
                vmem_limit_bytes=vmem_limit,
            ),
            cost_estimate=pl.CostEstimate(
                flops=flops,
                transcendentals=transcendentals,
                bytes_accessed=bytes_accessed,
            ),
        )(*inputs)

    try:
        out = _run(True)
    except Exception:
        # Fallback for JAX versions that reject single-buffered pipeline_mode.
        out = _run(False)

    # Row 0 of the slab holds the real logit; padded batch columns are dropped.
    return out[0, :batch].reshape(batch, 1)


def init_params(key, input_size, hidden_size, hidden_layers, reduction_factor):
    """Deterministic init mirroring nn.Linear default (uniform +/- 1/sqrt(fan_in)).

    Weights stored as [in_features, out_features] (transposed vs. PyTorch)."""
    sizes = _layer_sizes(input_size, hidden_size, hidden_layers, reduction_factor)

    dims = [(input_size, sizes[0])]                       # fc1
    for i in range(hidden_layers):                        # hidden Linears
        dims.append((sizes[i], sizes[i + 1]))
    dims.append((sizes[-1], 1))                           # fc_output

    params = []
    for (fan_in, fan_out) in dims:
        key, kw, kb = jax.random.split(key, 3)
        bound = 1.0 / math.sqrt(fan_in)
        w = jax.random.uniform(kw, (fan_in, fan_out), jnp.float32, -bound, bound)
        b = jax.random.uniform(kb, (1, fan_out), jnp.float32, -bound, bound)
        params += [w, b]
    return params


def reference_forward(x, params, num_hidden_linears):
    """Plain-JAX f32 reference for correctness checking."""
    w1, b1 = params[0], params[1]
    z = jax.nn.sigmoid(x @ w1 + b1)
    z = jnp.maximum(z, 0.0)
    for li in range(num_hidden_linears):
        w = params[2 + 2 * li]
        b = params[3 + 2 * li]
        z = jnp.maximum(z @ w + b, 0.0)
    w_out, b_out = params[-2], params[-1]
    return jax.nn.sigmoid(z @ w_out + b_out)


if __name__ == "__main__":
    # Small, deterministic configuration.
    batch = 2
    input_size = 32
    hidden_size = 32
    hidden_layers = 2
    reduction_factor = 0.8   # 32 -> 25 -> 20 -> 1

    key = jax.random.PRNGKey(0)
    key, kx = jax.random.split(key)
    x = jax.random.normal(kx, (batch, input_size), jnp.float32)

    params = init_params(key, input_size, hidden_size, hidden_layers, reduction_factor)

    out = discriminator_forward(x, params, hidden_layers)
    out = jax.block_until_ready(out)

    ref = reference_forward(x, params, hidden_layers)
    assert out.shape == (batch, 1), out.shape
    # bf16 MXU inputs + approximate-reciprocal sigmoid -> loose-but-meaningful tolerance.
    assert jnp.allclose(out, ref, atol=2e-2, rtol=2e-2), (out, ref)

    print("KERNEL_OK")
</pallas_src>

<mosaic_0001>
module attributes {stable_mosaic.version = 11 : i64} {
  func.func @kernel(%arg0: i32, %arg1: memref<128x128xbf16, #tpu.memory_space<vmem>>, %arg2: memref<128x128xbf16, #tpu.memory_space<vmem>>, %arg3: memref<128x1xf32, #tpu.memory_space<vmem>>, %arg4: memref<128x128xbf16, #tpu.memory_space<vmem>>, %arg5: memref<128x1xf32, #tpu.memory_space<vmem>>, %arg6: memref<128x128xbf16, #tpu.memory_space<vmem>>, %arg7: memref<128x1xf32, #tpu.memory_space<vmem>>, %arg8: memref<16x128xbf16, #tpu.memory_space<vmem>>, %arg9: memref<16x1xf32, #tpu.memory_space<vmem>>, %arg10: memref<16x128xf32, #tpu.memory_space<vmem>>) attributes {dimension_semantics = [#tpu.dimension_semantics<parallel>], iteration_bounds = array<i64: 1>, scalar_prefetch = 0 : i64, scratch_operands = 0 : i64, tpu.core_type = #tpu.core_type<tc>, window_params = [{transform_indices = @transform_0, window_bounds = array<i64: 128, 128>}, {pipeline_mode = #tpu.pipeline_mode<synchronous>, transform_indices = @transform_1, window_bounds = array<i64: 128, 128>}, {pipeline_mode = #tpu.pipeline_mode<synchronous>, transform_indices = @transform_2, window_bounds = array<i64: 128, 1>}, {pipeline_mode = #tpu.pipeline_mode<synchronous>, transform_indices = @transform_3, window_bounds = array<i64: 128, 128>}, {pipeline_mode = #tpu.pipeline_mode<synchronous>, transform_indices = @transform_4, window_bounds = array<i64: 128, 1>}, {pipeline_mode = #tpu.pipeline_mode<synchronous>, transform_indices = @transform_5, window_bounds = array<i64: 128, 128>}, {pipeline_mode = #tpu.pipeline_mode<synchronous>, transform_indices = @transform_6, window_bounds = array<i64: 128, 1>}, {pipeline_mode = #tpu.pipeline_mode<synchronous>, transform_indices = @transform_7, window_bounds = array<i64: 16, 128>}, {pipeline_mode = #tpu.pipeline_mode<synchronous>, transform_indices = @transform_8, window_bounds = array<i64: 16, 1>}, {transform_indices = @transform_9, window_bounds = array<i64: 16, 128>}]} {
    %c0 = arith.constant 0 : index
    %c0_0 = arith.constant 0 : index
    %0 = vector.load %arg1[%c0, %c0_0] : memref<128x128xbf16, #tpu.memory_space<vmem>>, vector<128x128xbf16>
    %c0_1 = arith.constant 0 : index
    %c0_2 = arith.constant 0 : index
    %1 = vector.load %arg2[%c0_1, %c0_2] : memref<128x128xbf16, #tpu.memory_space<vmem>>, vector<128x128xbf16>
    %cst = arith.constant dense<0.000000e+00> : vector<128x128xf32>
    %2 = tpu.matmul %1, %0, %cst {dimension_numbers = #tpu.dot_dimension_numbers<[1], [0], [0], [1], [0, 0, 1, 1], [], []>} : vector<128x128xbf16>, vector<128x128xbf16>, vector<128x128xf32> -> vector<128x128xf32>
    %c0_3 = arith.constant 0 : index
    %c0_4 = arith.constant 0 : index
    %3 = vector.load %arg3[%c0_3, %c0_4] : memref<128x1xf32, #tpu.memory_space<vmem>>, vector<128x1xf32>
    %4 = vector.broadcast %3 : vector<128x1xf32> to vector<128x128xf32>
    %5 = arith.addf %2, %4 : vector<128x128xf32>
    %cst_5 = arith.constant 0.000000e+00 : f32
    %6 = vector.broadcast %cst_5 : f32 to vector<128x128xf32>
    %7 = arith.subf %6, %5 : vector<128x128xf32>
    %8 = math.exp %7 : vector<128x128xf32>
    %cst_6 = arith.constant 1.000000e+00 : f32
    %9 = vector.broadcast %cst_6 : f32 to vector<128x128xf32>
    %10 = arith.addf %9, %8 : vector<128x128xf32>
    %11 = tpu.reciprocal %10 {approx = true} : vector<128x128xf32> -> vector<128x128xf32>
    %c0_7 = arith.constant 0 : index
    %c0_8 = arith.constant 0 : index
    %12 = vector.load %arg4[%c0_7, %c0_8] : memref<128x128xbf16, #tpu.memory_space<vmem>>, vector<128x128xbf16>
    %13 = arith.truncf %11 : vector<128x128xf32> to vector<128x128xbf16>
    %cst_9 = arith.constant dense<0.000000e+00> : vector<128x128xf32>
    %14 = tpu.matmul %12, %13, %cst_9 {dimension_numbers = #tpu.dot_dimension_numbers<[1], [0], [0], [1], [0, 0, 1, 1], [], []>} : vector<128x128xbf16>, vector<128x128xbf16>, vector<128x128xf32> -> vector<128x128xf32>
    %c0_10 = arith.constant 0 : index
    %c0_11 = arith.constant 0 : index
    %15 = vector.load %arg5[%c0_10, %c0_11] : memref<128x1xf32, #tpu.memory_space<vmem>>, vector<128x1xf32>
    %16 = vector.broadcast %15 : vector<128x1xf32> to vector<128x128xf32>
    %17 = arith.addf %14, %16 : vector<128x128xf32>
    %cst_12 = arith.constant 0.000000e+00 : f32
    %18 = vector.broadcast %cst_12 : f32 to vector<128x128xf32>
    %19 = arith.maximumf %17, %18 : vector<128x128xf32>
    %c0_13 = arith.constant 0 : index
    %c0_14 = arith.constant 0 : index
    %20 = vector.load %arg6[%c0_13, %c0_14] : memref<128x128xbf16, #tpu.memory_space<vmem>>, vector<128x128xbf16>
    %21 = arith.truncf %19 : vector<128x128xf32> to vector<128x128xbf16>
    %cst_15 = arith.constant dense<0.000000e+00> : vector<128x128xf32>
    %22 = tpu.matmul %20, %21, %cst_15 {dimension_numbers = #tpu.dot_dimension_numbers<[1], [0], [0], [1], [0, 0, 1, 1], [], []>} : vector<128x128xbf16>, vector<128x128xbf16>, vector<128x128xf32> -> vector<128x128xf32>
    %c0_16 = arith.constant 0 : index
    %c0_17 = arith.constant 0 : index
    %23 = vector.load %arg7[%c0_16, %c0_17] : memref<128x1xf32, #tpu.memory_space<vmem>>, vector<128x1xf32>
    %24 = vector.broadcast %23 : vector<128x1xf32> to vector<128x128xf32>
    %25 = arith.addf %22, %24 : vector<128x128xf32>
    %cst_18 = arith.constant 0.000000e+00 : f32
    %26 = vector.broadcast %cst_18 : f32 to vector<128x128xf32>
    %27 = arith.maximumf %25, %26 : vector<128x128xf32>
    %c0_19 = arith.constant 0 : index
    %c0_20 = arith.constant 0 : index
    %28 = vector.load %arg8[%c0_19, %c0_20] : memref<16x128xbf16, #tpu.memory_space<vmem>>, vector<16x128xbf16>
    %29 = arith.truncf %27 : vector<128x128xf32> to vector<128x128xbf16>
    %cst_21 = arith.constant dense<0.000000e+00> : vector<16x128xf32>
    %30 = tpu.matmul %28, %29, %cst_21 {dimension_numbers = #tpu.dot_dimension_numbers<[1], [0], [0], [1], [0, 0, 1, 1], [], []>} : vector<16x128xbf16>, vector<128x128xbf16>, vector<16x128xf32> -> vector<16x128xf32>
    %c0_22 = arith.constant 0 : index
    %c0_23 = arith.constant 0 : index
    %31 = vector.load %arg9[%c0_22, %c0_23] : memref<16x1xf32, #tpu.memory_space<vmem>>, vector<16x1xf32>
    %32 = vector.broadcast %31 : vector<16x1xf32> to vector<16x128xf32>
    %33 = arith.addf %30, %32 : vector<16x128xf32>
    %cst_24 = arith.constant 0.000000e+00 : f32
    %34 = vector.broadcast %cst_24 : f32 to vector<16x128xf32>
    %35 = arith.subf %34, %33 : vector<16x128xf32>
    %36 = math.exp %35 : vector<16x128xf32>
    %cst_25 = arith.constant 1.000000e+00 : f32
    %37 = vector.broadcast %cst_25 : f32 to vector<16x128xf32>
    %38 = arith.addf %37, %36 : vector<16x128xf32>
    %39 = tpu.reciprocal %38 {approx = true} : vector<16x128xf32> -> vector<16x128xf32>
    %c0_26 = arith.constant 0 : index
    %c0_27 = arith.constant 0 : index
    %40 = vector.load %arg10[%c0_26, %c0_27] : memref<16x128xf32, #tpu.memory_space<vmem>>, vector<16x128xf32>
    tpu.vector_store %arg10[%c0_26, %c0_27], %39 {strides = array<i32>} : memref<16x128xf32, #tpu.memory_space<vmem>>, vector<16x128xf32>,
    return
  }
  func.func @transform_0(%arg0: i32) -> (i32, i32) {
    %c0_i32 = arith.constant 0 : i32
    %c0_i32_0 = arith.constant 0 : i32
    return %c0_i32, %arg0 : i32, i32
  }
  func.func @transform_1(%arg0: i32) -> (i32, i32) {
    %c0_i32 = arith.constant 0 : i32
    %c0_i32_0 = arith.constant 0 : i32
    %c0_i32_1 = arith.constant 0 : i32
    return %c0_i32, %c0_i32_0 : i32, i32
  }
  func.func @transform_2(%arg0: i32) -> (i32, i32) {
    %c0_i32 = arith.constant 0 : i32
    %c0_i32_0 = arith.constant 0 : i32
    %c0_i32_1 = arith.constant 0 : i32
    return %c0_i32, %c0_i32_0 : i32, i32
  }
  func.func @transform_3(%arg0: i32) -> (i32, i32) {
    %c0_i32 = arith.constant 0 : i32
    %c0_i32_0 = arith.constant 0 : i32
    %c0_i32_1 = arith.constant 0 : i32
    return %c0_i32, %c0_i32_0 : i32, i32
  }
  func.func @transform_4(%arg0: i32) -> (i32, i32) {
    %c0_i32 = arith.constant 0 : i32
    %c0_i32_0 = arith.constant 0 : i32
    %c0_i32_1 = arith.constant 0 : i32
    return %c0_i32, %c0_i32_0 : i32, i32
  }
  func.func @transform_5(%arg0: i32) -> (i32, i32) {
    %c0_i32 = arith.constant 0 : i32
    %c0_i32_0 = arith.constant 0 : i32
    %c0_i32_1 = arith.constant 0 : i32
    return %c0_i32, %c0_i32_0 : i32, i32
  }
  func.func @transform_6(%arg0: i32) -> (i32, i32) {
    %c0_i32 = arith.constant 0 : i32
    %c0_i32_0 = arith.constant 0 : i32
    %c0_i32_1 = arith.constant 0 : i32
    return %c0_i32, %c0_i32_0 : i32, i32
  }
  func.func @transform_7(%arg0: i32) -> (i32, i32) {
    %c0_i32 = arith.constant 0 : i32
    %c0_i32_0 = arith.constant 0 : i32
    %c0_i32_1 = arith.constant 0 : i32
    return %c0_i32, %c0_i32_0 : i32, i32
  }
  func.func @transform_8(%arg0: i32) -> (i32, i32) {
    %c0_i32 = arith.constant 0 : i32
    %c0_i32_0 = arith.constant 0 : i32
    %c0_i32_1 = arith.constant 0 : i32
    return %c0_i32, %c0_i32_0 : i32, i32
  }
  func.func @transform_9(%arg0: i32) -> (i32, i32) {
    %c0_i32 = arith.constant 0 : i32
    %c0_i32_0 = arith.constant 0 : i32
    return %c0_i32, %arg0 : i32, i32
  }
}

module attributes {stable_mosaic.version = 11 : i64} {
  func.func @kernel(%arg0: i32, %arg1: memref<128x128xbf16, #tpu.memory_space<vmem>>, %arg2: memref<128x128xbf16, #tpu.memory_space<vmem>>, %arg3: memref<128x1xf32, #tpu.memory_space<vmem>>, %arg4: memref<128x128xbf16, #tpu.memory_space<vmem>>, %arg5: memref<128x1xf32, #tpu.memory_space<vmem>>, %arg6: memref<128x128xbf16, #tpu.memory_space<vmem>>, %arg7: memref<128x1xf32, #tpu.memory_space<vmem>>, %arg8: memref<16x128xbf16, #tpu.memory_space<vmem>>, %arg9: memref<16x1xf32, #tpu.memory_space<vmem>>, %arg10: memref<16x128xf32, #tpu.memory_space<vmem>>) attributes {dimension_semantics = [#tpu.dimension_semantics<parallel>], iteration_bounds = array<i64: 1>, scalar_prefetch = 0 : i64, scratch_operands = 0 : i64, tpu.core_type = #tpu.core_type<tc>, window_params = [{transform_indices = @transform_0, window_bounds = array<i64: 128, 128>}, {pipeline_mode = #tpu.pipeline_mode<synchronous>, transform_indices = @transform_1, window_bounds = array<i64: 128, 128>}, {pipeline_mode = #tpu.pipeline_mode<synchronous>, transform_indices = @transform_2, window_bounds = array<i64: 128, 1>}, {pipeline_mode = #tpu.pipeline_mode<synchronous>, transform_indices = @transform_3, window_bounds = array<i64: 128, 128>}, {pipeline_mode = #tpu.pipeline_mode<synchronous>, transform_indices = @transform_4, window_bounds = array<i64: 128, 1>}, {pipeline_mode = #tpu.pipeline_mode<synchronous>, transform_indices = @transform_5, window_bounds = array<i64: 128, 128>}, {pipeline_mode = #tpu.pipeline_mode<synchronous>, transform_indices = @transform_6, window_bounds = array<i64: 128, 1>}, {pipeline_mode = #tpu.pipeline_mode<synchronous>, transform_indices = @transform_7, window_bounds = array<i64: 16, 128>}, {pipeline_mode = #tpu.pipeline_mode<synchronous>, transform_indices = @transform_8, window_bounds = array<i64: 16, 1>}, {transform_indices = @transform_9, window_bounds = array<i64: 16, 128>}]} {
    %c0 = arith.constant 0 : index
    %c0_0 = arith.constant 0 : index
    %0 = vector.load %arg1[%c0, %c0_0] : memref<128x128xbf16, #tpu.memory_space<vmem>>, vector<128x128xbf16>
    %c0_1 = arith.constant 0 : index
    %c0_2 = arith.constant 0 : index
    %1 = vector.load %arg2[%c0_1, %c0_2] : memref<128x128xbf16, #tpu.memory_space<vmem>>, vector<128x128xbf16>
    %cst = arith.constant dense<0.000000e+00> : vector<128x128xf32>
    %2 = tpu.matmul %1, %0, %cst {dimension_numbers = #tpu.dot_dimension_numbers<[1], [0], [0], [1], [0, 0, 1, 1], [], []>} : vector<128x128xbf16>, vector<128x128xbf16>, vector<128x128xf32> -> vector<128x128xf32>
    %c0_3 = arith.constant 0 : index
    %c0_4 = arith.constant 0 : index
    %3 = vector.load %arg3[%c0_3, %c0_4] : memref<128x1xf32, #tpu.memory_space<vmem>>, vector<128x1xf32>
    %4 = vector.broadcast %3 : vector<128x1xf32> to vector<128x128xf32>
    %5 = arith.addf %2, %4 : vector<128x128xf32>
    %cst_5 = arith.constant 0.000000e+00 : f32
    %6 = vector.broadcast %cst_5 : f32 to vector<128x128xf32>
    %7 = arith.subf %6, %5 : vector<128x128xf32>
    %8 = math.exp %7 : vector<128x128xf32>
    %cst_6 = arith.constant 1.000000e+00 : f32
    %9 = vector.broadcast %cst_6 : f32 to vector<128x128xf32>
    %10 = arith.addf %9, %8 : vector<128x128xf32>
    %11 = tpu.reciprocal %10 {approx = true} : vector<128x128xf32> -> vector<128x128xf32>
    %c0_7 = arith.constant 0 : index
    %c0_8 = arith.constant 0 : index
    %12 = vector.load %arg4[%c0_7, %c0_8] : memref<128x128xbf16, #tpu.memory_space<vmem>>, vector<128x128xbf16>
    %13 = arith.truncf %11 : vector<128x128xf32> to vector<128x128xbf16>
    %cst_9 = arith.constant dense<0.000000e+00> : vector<128x128xf32>
    %14 = tpu.matmul %12, %13, %cst_9 {dimension_numbers = #tpu.dot_dimension_numbers<[1], [0], [0], [1], [0, 0, 1, 1], [], []>} : vector<128x128xbf16>, vector<128x128xbf16>, vector<128x128xf32> -> vector<128x128xf32>
    %c0_10 = arith.constant 0 : index
    %c0_11 = arith.constant 0 : index
    %15 = vector.load %arg5[%c0_10, %c0_11] : memref<128x1xf32, #tpu.memory_space<vmem>>, vector<128x1xf32>
    %16 = vector.broadcast %15 : vector<128x1xf32> to vector<128x128xf32>
    %17 = arith.addf %14, %16 : vector<128x128xf32>
    %cst_12 = arith.constant 0.000000e+00 : f32
    %18 = vector.broadcast %cst_12 : f32 to vector<128x128xf32>
    %19 = arith.maximumf %17, %18 : vector<128x128xf32>
    %c0_13 = arith.constant 0 : index
    %c0_14 = arith.constant 0 : index
    %20 = vector.load %arg6[%c0_13, %c0_14] : memref<128x128xbf16, #tpu.memory_space<vmem>>, vector<128x128xbf16>
    %21 = arith.truncf %19 : vector<128x128xf32> to vector<128x128xbf16>
    %cst_15 = arith.constant dense<0.000000e+00> : vector<128x128xf32>
    %22 = tpu.matmul %20, %21, %cst_15 {dimension_numbers = #tpu.dot_dimension_numbers<[1], [0], [0], [1], [0, 0, 1, 1], [], []>} : vector<128x128xbf16>, vector<128x128xbf16>, vector<128x128xf32> -> vector<128x128xf32>
    %c0_16 = arith.constant 0 : index
    %c0_17 = arith.constant 0 : index
    %23 = vector.load %arg7[%c0_16, %c0_17] : memref<128x1xf32, #tpu.memory_space<vmem>>, vector<128x1xf32>
    %24 = vector.broadcast %23 : vector<128x1xf32> to vector<128x128xf32>
    %25 = arith.addf %22, %24 : vector<128x128xf32>
    %cst_18 = arith.constant 0.000000e+00 : f32
    %26 = vector.broadcast %cst_18 : f32 to vector<128x128xf32>
    %27 = arith.maximumf %25, %26 : vector<128x128xf32>
    %c0_19 = arith.constant 0 : index
    %c0_20 = arith.constant 0 : index
    %28 = vector.load %arg8[%c0_19, %c0_20] : memref<16x128xbf16, #tpu.memory_space<vmem>>, vector<16x128xbf16>
    %29 = arith.truncf %27 : vector<128x128xf32> to vector<128x128xbf16>
    %cst_21 = arith.constant dense<0.000000e+00> : vector<16x128xf32>
    %30 = tpu.matmul %28, %29, %cst_21 {dimension_numbers = #tpu.dot_dimension_numbers<[1], [0], [0], [1], [0, 0, 1, 1], [], []>} : vector<16x128xbf16>, vector<128x128xbf16>, vector<16x128xf32> -> vector<16x128xf32>
    %c0_22 = arith.constant 0 : index
    %c0_23 = arith.constant 0 : index
    %31 = vector.load %arg9[%c0_22, %c0_23] : memref<16x1xf32, #tpu.memory_space<vmem>>, vector<16x1xf32>
    %32 = vector.broadcast %31 : vector<16x1xf32> to vector<16x128xf32>
    %33 = arith.addf %30, %32 : vector<16x128xf32>
    %cst_24 = arith.constant 0.000000e+00 : f32
    %34 = vector.broadcast %cst_24 : f32 to vector<16x128xf32>
    %35 = arith.subf %34, %33 : vector<16x128xf32>
    %36 = math.exp %35 : vector<16x128xf32>
    %cst_25 = arith.constant 1.000000e+00 : f32
    %37 = vector.broadcast %cst_25 : f32 to vector<16x128xf32>
    %38 = arith.addf %37, %36 : vector<16x128xf32>
    %39 = tpu.reciprocal %38 {approx = true} : vector<16x128xf32> -> vector<16x128xf32>
    %c0_26 = arith.constant 0 : index
    %c0_27 = arith.constant 0 : index
    %40 = vector.load %arg10[%c0_26, %c0_27] : memref<16x128xf32, #tpu.memory_space<vmem>>, vector<16x128xf32>
    tpu.vector_store %arg10[%c0_26, %c0_27], %39 {strides = array<i32>} : memref<16x128xf32, #tpu.memory_space<vmem>>, vector<16x128xf32>,
    return
  }
  func.func @transform_0(%arg0: i32) -> (i32, i32) {
    %c0_i32 = arith.constant 0 : i32
    %c0_i32_0 = arith.constant 0 : i32
    return %c0_i32, %arg0 : i32, i32
  }
  func.func @transform_1(%arg0: i32) -> (i32, i32) {
    %c0_i32 = arith.constant 0 : i32
    %c0_i32_0 = arith.constant 0 : i32
    %c0_i32_1 = arith.constant 0 : i32
    return %c0_i32, %c0_i32_0 : i32, i32
  }
  func.func @transform_2(%arg0: i32) -> (i32, i32) {
    %c0_i32 = arith.constant 0 : i32
    %c0_i32_0 = arith.constant 0 : i32
    %c0_i32_1 = arith.constant 0 : i32
    return %c0_i32, %c0_i32_0 : i32, i32
  }
  func.func @transform_3(%arg0: i32) -> (i32, i32) {
    %c0_i32 = arith.constant 0 : i32
    %c0_i32_0 = arith.constant 0 : i32
    %c0_i32_1 = arith.constant 0 : i32
    return %c0_i32, %c0_i32_0 : i32, i32
  }
  func.func @transform_4(%arg0: i32) -> (i32, i32) {
    %c0_i32 = arith.constant 0 : i32
    %c0_i32_0 = arith.constant 0 : i32
    %c0_i32_1 = arith.constant 0 : i32
    return %c0_i32, %c0_i32_0 : i32, i32
  }
  func.func @transform_5(%arg0: i32) -> (i32, i32) {
    %c0_i32 = arith.constant 0 : i32
    %c0_i32_0 = arith.constant 0 : i32
    %c0_i32_1 = arith.constant 0 : i32
    return %c0_i32, %c0_i32_0 : i32, i32
  }
  func.func @transform_6(%arg0: i32) -> (i32, i32) {
    %c0_i32 = arith.constant 0 : i32
    %c0_i32_0 = arith.constant 0 : i32
    %c0_i32_1 = arith.constant 0 : i32
    return %c0_i32, %c0_i32_0 : i32, i32
  }
  func.func @transform_7(%arg0: i32) -> (i32, i32) {
    %c0_i32 = arith.constant 0 : i32
    %c0_i32_0 = arith.constant 0 : i32
    %c0_i32_1 = arith.constant 0 : i32
    return %c0_i32, %c0_i32_0 : i32, i32
  }
  func.func @transform_8(%arg0: i32) -> (i32, i32) {
    %c0_i32 = arith.constant 0 : i32
    %c0_i32_0 = arith.constant 0 : i32
    %c0_i32_1 = arith.constant 0 : i32
    return %c0_i32, %c0_i32_0 : i32, i32
  }
  func.func @transform_9(%arg0: i32) -> (i32, i32) {
    %c0_i32 = arith.constant 0 : i32
    %c0_i32_0 = arith.constant 0 : i32
    return %c0_i32, %arg0 : i32, i32
  }
}

</mosaic_0001>

<bundles_post_ra>
// kernel: tpu_custom_call.1
= control target key start
LH: loop header
LB: loop body
LE: loop exit
PB: predicated region body
PF: predicated region fallthrough
CT: control target
= control target key end

     0   :  { %v1435_v2 = vmov 0   ;;  %s1776_s0 = inlined_call_operand.vmem [shape: bf16[128,128], index: 0, kind: input, shape index: {}]   ;;  %s1777_s1 = inlined_call_operand.vmem [shape: bf16[128,128], index: 1, kind: input, shape index: {}]   ;;  %s1778_s2 = inlined_call_operand.vmem [shape: f32[128,1], index: 2, kind: input, shape index: {}]   ;;  %s1779_s3 = inlined_call_operand.vmem [shape: bf16[128,128], index: 3, kind: input, shape index: {}]   ;;  %s1780_s4 = inlined_call_operand.vmem [shape: f32[128,1], index: 4, kind: input, shape index: {}]   ;;  %s1781_s5 = inlined_call_operand.vmem [shape: bf16[128,128], index: 5, kind: input, shape index: {}]   ;;  %s1782_s6 = inlined_call_operand.vmem [shape: f32[128,1], index: 6, kind: input, shape index: {}]   ;;  %s1783_s7 = inlined_call_operand.vmem [shape: bf16[16,128], index: 7, kind: input, shape index: {}]   ;;  %s1784_s8 = inlined_call_operand.vmem [shape: f32[16,1], index: 8, kind: input, shape index: {}]   ;;  %s1785_s9 = inlined_call_operand.hbm [shape: f32[16,128], index: 9, kind: output, shape index: {}]  }
   0x1   :  { %v1308_v0 = vld [vmem:[%s1776_s0 + $0x38] sm:$0xff]   ;;  %v1309_v1 = vld [vmem:[%s1776_s0 + $0x30] sm:$0xff]   ;;  %1306 = vset.pattern.permute.xlu0 %v1435_v2  ;;  %1307 = vset.pattern.permute.xlu1 %v1435_v2  ;;  %v1310_v3 = vld [vmem:[%s1776_s0 + $0x28] sm:$0xff]  }
   0x2   :  { %1184 = vmatprep.subr.bf16.mxu0 %v1308_v0  ;;  %v1311_v4 = vld [vmem:[%s1776_s0 + $0x20] sm:$0xff]   ;;  %v80_v5 = vld [vmem:[%s1778_s2 + $0x70] sm:$0xff]  ;;  %v81_v7 = vld [vmem:[%s1778_s2 + $0x78] sm:$0xff] }
   0x3   :  { %1185 = vmatpush3.bf16.msra.mxu0 %v1308_v0  ;;  %154 = vperm.xlu0 %1306, %v80_v5   ;;  %v1316_v6 = vld [vmem:[%s1777_s1] sm:$0xff]   ;;  %v1312_v9 = vld [vmem:[%s1776_s0 + $0x18] sm:$0xff]   ;;  %v79_v10 = vld [vmem:[%s1778_s2 + $0x68] sm:$0xff] }
   0x4   :  { %1186 = vmatprep.subr.bf16.mxu0 %v1309_v1  ;;  %v78_v8 = vld [vmem:[%s1778_s2 + $0x60] sm:$0xff]  ;;  %1200 = vmatprep.mubr.bf16.mxu0 %v1316_v6  ;;  %v76_v11 = vld [vmem:[%s1778_s2 + $0x50] sm:$0xff]  ;;  %v77_v13 = vld [vmem:[%s1778_s2 + $0x58] sm:$0xff] }
   0x5   :  { %144 = vperm.xlu1 %1307, %v78_v8   ;;  %v1313_v12 = vld [vmem:[%s1776_s0 + $0x10] sm:$0xff]   ;;  %v74_v14 = vld [vmem:[%s1778_s2 + $0x40] sm:$0xff]  ;;  %v1314_v15 = vld [vmem:[%s1776_s0 + $0x8] sm:$0xff]  }
   0x6   :  { %v75_v16 = vld [vmem:[%s1778_s2 + $0x48] sm:$0xff]  ;;  %v72_v17 = vld [vmem:[%s1778_s2 + $0x30] sm:$0xff]  ;;  %v1315_v18 = vld [vmem:[%s1776_s0] sm:$0xff]  }
   0x7   :  { %1187 = vmatpush3.bf16.msra.mxu0 %v1309_v1  ;;  %159 = vperm.xlu0 %1306, %v81_v7   ;;  %v73_v19 = vld [vmem:[%s1778_s2 + $0x38] sm:$0xff]  ;;  %v70_v20 = vld [vmem:[%s1778_s2 + $0x20] sm:$0xff]  ;;  %v71_v21 = vld [vmem:[%s1778_s2 + $0x28] sm:$0xff] }
   0x8   :  { %1188 = vmatprep.subr.bf16.mxu0 %v1310_v3  ;;  %v1317_v22 = vld [vmem:[%s1777_s1 + $0x8] sm:$0xff]   ;;  %v68_v23 = vld [vmem:[%s1778_s2 + $0x10] sm:$0xff]  ;;  %v69_v25 = vld [vmem:[%s1778_s2 + $0x18] sm:$0xff] }
   0x9   :  { %149 = vperm.xlu1 %1307, %v79_v10   ;;  %v1318_v24 = vld [vmem:[%s1777_s1 + $0x10] sm:$0xff]   ;;  %v66_v26 = vld [vmem:[%s1778_s2] sm:$0xff]  ;;  %v67_v27 = vld [vmem:[%s1778_s2 + $0x8] sm:$0xff] }
   0xa   :  { %v1319_v28 = vld [vmem:[%s1777_s1 + $0x18] sm:$0xff]   ;;  %v473_v29 = vld [vmem:[%s1780_s4 + $0x70] sm:$0xff]  ;;  %v1320_v30 = vld [vmem:[%s1777_s1 + $0x20] sm:$0xff]  }
   0xb   :  { %1189 = vmatpush3.bf16.msra.mxu0 %v1310_v3  ;;  %134 = vperm.xlu0 %1306, %v76_v11   ;;  %v474_v31 = vld [vmem:[%s1780_s4 + $0x78] sm:$0xff]  ;;  %v471_v32 = vld [vmem:[%s1780_s4 + $0x60] sm:$0xff] }
   0xc   :  { %1190 = vmatprep.subr.bf16.mxu0 %v1311_v4 }
   0xd   :  { %139 = vperm.xlu1 %1307, %v77_v13  }
   0xf   :  { %1191 = vmatpush3.bf16.msra.mxu0 %v1311_v4  ;;  %124 = vperm.xlu0 %1306, %v74_v14  }
  0x10   :  { %1192 = vmatprep.subr.bf16.mxu0 %v1312_v9 }
  0x11   :  { %129 = vperm.xlu1 %1307, %v75_v16  }
  0x13   :  { %1193 = vmatpush3.bf16.msra.mxu0 %v1312_v9  ;;  %114 = vperm.xlu0 %1306, %v72_v17  }
  0x14   :  { %1194 = vmatprep.subr.bf16.mxu0 %v1313_v12 }
  0x15   :  { %119 = vperm.xlu1 %1307, %v73_v19  }
  0x17   :  { %1195 = vmatpush3.bf16.msra.mxu0 %v1313_v12  ;;  %104 = vperm.xlu0 %1306, %v70_v20  }
  0x18   :  { %1196 = vmatprep.subr.bf16.mxu0 %v1314_v15 }
  0x19   :  { %109 = vperm.xlu1 %1307, %v71_v21  }
  0x1b   :  { %1197 = vmatpush3.bf16.msra.mxu0 %v1314_v15  ;;  %94 = vperm.xlu0 %1306, %v68_v23  }
  0x1c   :  { %1198 = vmatprep.subr.bf16.mxu0 %v1315_v18 }
  0x1d   :  { %99 = vperm.xlu1 %1307, %v69_v25  }
  0x1f   :  { %1199 = vmatpush3.bf16.msra.mxu0 %v1315_v18  ;;  %84 = vperm.xlu0 %1306, %v66_v26  }
  0x21   :  { %89 = vperm.xlu1 %1307, %v67_v27  }
  0x22   :  { %1201 = vmatmul.mubr.bf16.vlgmr.msra.gmra.mxu0 %v1317_v22 }
  0x23   :  { %1204 = vmatprep.mubr.bf16.mxu0 %v1318_v24  ;;  %547 = vperm.xlu0 %1306, %v473_v29  }
  0x25   :  { %552 = vperm.xlu1 %1307, %v474_v31  }
  0x2a   :  { %1205 = vmatmul.mubr.bf16.gmra.mxu0 %v1319_v28 }
  0x2b   :  { %1208 = vmatprep.mubr.bf16.mxu0 %v1320_v30 }
  0x2c   :  { %14 = vsyncpa [#allocation3], 0  ;;  %537 = vperm.xlu0 %1306, %v471_v32   ;;  %v472_v33 = vld [vmem:[%s1780_s4 + $0x68] sm:$0xff]  ;;  %v469_v35 = vld [vmem:[%s1780_s4 + $0x50] sm:$0xff]  ;;  %vm1437_vm0 = vmmov 0  }
  0x2d   :  { %v1321_v34 = vld [vmem:[%s1777_s1 + $0x28] sm:$0xff]   ;;  %v1322_v36 = vld [vmem:[%s1777_s1 + $0x30] sm:$0xff]   ;;  %542 = vperm.xlu1 %1307, %v472_v33   ;;  %v470_v37 = vld [vmem:[%s1780_s4 + $0x58] sm:$0xff] }
  0x2e   :  { %v467_v38 = vld [vmem:[%s1780_s4 + $0x40] sm:$0xff]  ;;  %v468_v39 = vld [vmem:[%s1780_s4 + $0x48] sm:$0xff]  ;;  %v1323_v40 = vld [vmem:[%s1777_s1 + $0x38] sm:$0xff]  }
  0x2f   :  { %v465_v41 = vld [vmem:[%s1780_s4 + $0x30] sm:$0xff]  ;;  %v466_v42 = vld [vmem:[%s1780_s4 + $0x38] sm:$0xff]  ;;  %v463_v43 = vld [vmem:[%s1780_s4 + $0x20] sm:$0xff] }
  0x30   :  { %527 = vperm.xlu0 %1306, %v469_v35   ;;  %v464_v44 = vld [vmem:[%s1780_s4 + $0x28] sm:$0xff]  ;;  %v461_v45 = vld [vmem:[%s1780_s4 + $0x10] sm:$0xff]  ;;  %v462_v46 = vld [vmem:[%s1780_s4 + $0x18] sm:$0xff] }
  0x31   :  { %532 = vperm.xlu1 %1307, %v470_v37   ;;  %v459_v47 = vld [vmem:[%s1780_s4] sm:$0xff]  ;;  %v460_v48 = vld [vmem:[%s1780_s4 + $0x8] sm:$0xff]  ;;  %v754_v49 = vld [vmem:[%s1782_s6 + $0x70] sm:$0xff] }
  0x32   :  { %1209 = vmatmul.mubr.bf16.gmra.mxu0 %v1321_v34  ;;  %v755_v50 = vld [vmem:[%s1782_s6 + $0x78] sm:$0xff]  ;;  %v752_v51 = vld [vmem:[%s1782_s6 + $0x60] sm:$0xff]  ;;  %v753_v52 = vld [vmem:[%s1782_s6 + $0x68] sm:$0xff] }
  0x33   :  { %1212 = vmatprep.mubr.bf16.mxu0 %v1322_v36  ;;  %v750_v53 = vld [vmem:[%s1782_s6 + $0x50] sm:$0xff]  ;;  %v751_v54 = vld [vmem:[%s1782_s6 + $0x58] sm:$0xff]  ;;  %v748_v55 = vld [vmem:[%s1782_s6 + $0x40] sm:$0xff] }
  0x34   :  { %517 = vperm.xlu0 %1306, %v467_v38   ;;  %v749_v56 = vld [vmem:[%s1782_s6 + $0x48] sm:$0xff]  ;;  %v746_v57 = vld [vmem:[%s1782_s6 + $0x30] sm:$0xff]  ;;  %v747_v58 = vld [vmem:[%s1782_s6 + $0x38] sm:$0xff] }
  0x35   :  { %522 = vperm.xlu1 %1307, %v468_v39   ;;  %v744_v59 = vld [vmem:[%s1782_s6 + $0x20] sm:$0xff]  ;;  %v745_v60 = vld [vmem:[%s1782_s6 + $0x28] sm:$0xff]  ;;  %v742_v61 = vld [vmem:[%s1782_s6 + $0x10] sm:$0xff] }
  0x36   :  { %v743_v62 = vld [vmem:[%s1782_s6 + $0x18] sm:$0xff]  ;;  %v740_v63 = vld [vmem:[%s1782_s6] sm:$0xff]  ;;  %v741_v0 = vld [vmem:[%s1782_s6 + $0x8] sm:$0xff] }
  0x37   :  { %v1007_v1 = vld [vmem:[%s1784_s8] sm:$0xff]  ;;  %v1008_v2 = vld [vmem:[%s1784_s8 + $0x8] sm:$0xff] }
  0x38   :  { %507 = vperm.xlu0 %1306, %v465_v41   ;;  %v1324_v3 = vld [vmem:[%s1779_s3] sm:$0xff]  }
  0x39   :  { %512 = vperm.xlu1 %1307, %v466_v42   ;;  %1232 = vmatprep.mubr.bf16.mxu1 %v1324_v3 }
  0x3a   :  { %1213 = vmatmul.mubr.bf16.gmra.mxu0 %v1323_v40 }
  0x3c   :  { %497 = vperm.xlu0 %1306, %v463_v43  }
  0x3d   :  { %502 = vperm.xlu1 %1307, %v464_v44  }
  0x40   :  { %487 = vperm.xlu0 %1306, %v461_v45  }
  0x41   :  { %492 = vperm.xlu1 %1307, %v462_v46  }
  0x44   :  { %477 = vperm.xlu0 %1306, %v459_v47  }
  0x45   :  { %482 = vperm.xlu1 %1307, %v460_v48  }
  0x48   :  { %828 = vperm.xlu0 %1306, %v754_v49  }
  0x49   :  { %833 = vperm.xlu1 %1307, %v755_v50  }
  0x4c   :  { %818 = vperm.xlu0 %1306, %v752_v51  }
  0x4d   :  { %823 = vperm.xlu1 %1307, %v753_v52  }
  0x50   :  { %808 = vperm.xlu0 %1306, %v750_v53  }
  0x51   :  { %813 = vperm.xlu1 %1307, %v751_v54  }
  0x54   :  { %798 = vperm.xlu0 %1306, %v748_v55  }
  0x55   :  { %803 = vperm.xlu1 %1307, %v749_v56  }
  0x58   :  { %788 = vperm.xlu0 %1306, %v746_v57  }
  0x59   :  { %793 = vperm.xlu1 %1307, %v747_v58  }
  0x5c   :  { %778 = vperm.xlu0 %1306, %v744_v59  }
  0x5d   :  { %783 = vperm.xlu1 %1307, %v745_v60  }
  0x60   :  { %768 = vperm.xlu0 %1306, %v742_v61  }
  0x61   :  { %773 = vperm.xlu1 %1307, %v743_v62  }
  0x64   :  { %758 = vperm.xlu0 %1306, %v740_v63  }
  0x65   :  { %763 = vperm.xlu1 %1307, %v741_v0  }
  0x68   :  { %1011 = vperm.xlu0 %1306, %v1007_v1  }
  0x69   :  { %1016 = vperm.xlu1 %1307, %v1008_v2  }
  0x7e   :  { %v155_v4 = vpop.permute.xlu0 %154 }
  0x80   :  { %v145_v5 = vpop.permute.xlu1 %144 }
  0x82   :  { %v160_v8 = vpop.permute.xlu0 %159 }
  0x84   :  { %v150_v10 = vpop.permute.xlu1 %149 }
  0x86   :  { %v135_v13 = vpop.permute.xlu0 %134 }
  0x88   :  { %v140_v15 = vpop.permute.xlu1 %139 }
  0x8a   :  { %v125_v18 = vpop.permute.xlu0 %124 }
  0x8c   :  { %v130_v20 = vpop.permute.xlu1 %129 }
  0x8e   :  { %v115_v23 = vpop.permute.xlu0 %114 }
  0x90   :  { %v120_v26 = vpop.permute.xlu1 %119 }
  0x92   :  { %v105_v33 = vpop.permute.xlu0 %104 }
  0x94   :  { %v110_v40 = vpop.permute.xlu1 %109 }
  0x96   :  { %v95_v53 = vpop.permute.xlu0 %94 }
  0x98   :  { %v100_v58 = vpop.permute.xlu1 %99 }
  0xe2   :  { %v1202_v6 = vpop.f32.mrf.mxu0 }
  0xe3   :  { %v301_v56 = vadd.f32 %v1202_v6, %v95_v53 }
  0xe4   :  { %v1692_v7 = vpop.f32.mrf.mxu0 }
  0xe5   :  { %v357_v2 = vsub.f32 0.0, %v301_v56 }
  0xe6   :  { %v1203_v9 = vpop.f32.mrf.mxu0 }
  0xe7   :  { %v304_v62 = vadd.f32 %v1203_v9, %v100_v58 }
  0xe8   :  { %v1694_v11 = vpop.f32.mrf.mxu0 }
  0xea   :  { %v1206_v12 = vpop.f32.mrf.mxu0 }
  0xeb   :  { %v317_v54 = vadd.f32 %v1206_v12, %v115_v23  ;;  %v375_v12 = vmul.f32 1.442695, %v357_v2 }
  0xec   :  { %v308_v14 = vpop.f32.mrf.mxu0 }
  0xed   :  { %v361_v63 = vsub.f32 0.0, %v317_v54  ;;  %v309_v0 = vadd.f32 %v308_v14, %v105_v33 }
  0xee   :  { %v1207_v16 = vpop.f32.mrf.mxu0 }
  0xef   :  { %v320_v47 = vadd.f32 %v1207_v16, %v120_v26  ;;  %v383_v6 = vmul.f32 1.442695, %v361_v63 }
  0xf0   :  { %v311_v17 = vpop.f32.mrf.mxu0 }
  0xf1   :  { %v362_v59 = vsub.f32 0.0, %v320_v47  ;;  %v312_v60 = vadd.f32 %v311_v17, %v110_v40 }
  0xf2   :  { %v1210_v19 = vpop.f32.mrf.mxu0 }
  0xf3   :  { %v333_v28 = vadd.f32 %v1210_v19, %v135_v13  ;;  %v385_v3 = vmul.f32 1.442695, %v362_v59 }
  0xf4   :  { %v324_v21 = vpop.f32.mrf.mxu0 }
  0xf5   :  { %v365_v37 = vsub.f32 0.0, %v333_v28  ;;  %v325_v41 = vadd.f32 %v324_v21, %v125_v18 }
  0xf6   :  { %v1211_v22 = vpop.f32.mrf.mxu0 }
  0xf7   :  { %v336_v25 = vadd.f32 %v1211_v22, %v140_v15  ;;  %v391_v50 = vmul.f32 1.442695, %v365_v37  ;;  %v363_v55 = vsub.f32 0.0, %v325_v41  ;;  %v85_v15 = vpop.permute.xlu0 %84 }
  0xf8   :  { %v327_v24 = vpop.f32.mrf.mxu0  ;;  %v293_v14 = vadd.f32 %v1692_v7, %v85_v15 }
  0xf9   :  { %v366_v31 = vsub.f32 0.0, %v336_v25  ;;  %v328_v34 = vadd.f32 %v327_v24, %v130_v20  ;;  %v387_v1 = vmul.f32 1.442695, %v363_v55 }
  0xfa   :  { %v1214_v27 = vpop.f32.mrf.mxu0  ;;  %v355_v24 = vsub.f32 0.0, %v293_v14  ;;  %v1327_v14 = vld [vmem:[%s1779_s3 + $0x18] sm:$0xff]  }
  0xfb   :  { %v349_v29 = vadd.f32 %v1214_v27, %v155_v4  ;;  %v393_v44 = vmul.f32 1.442695, %v366_v31  ;;  %v364_v48 = vsub.f32 0.0, %v328_v34  ;;  %v360_v4 = vsub.f32 0.0, %v312_v60 }
  0xfc   :  { %v340_v30 = vpop.f32.mrf.mxu0  ;;  %v371_v31 = vmul.f32 1.442695, %v355_v24 }
  0xfd   :  { %v369_v32 = vsub.f32 0.0, %v349_v29  ;;  %v341_v35 = vadd.f32 %v340_v30, %v145_v5  ;;  %v389_v61 = vmul.f32 1.442695, %v364_v48  ;;  %v358_v5 = vsub.f32 0.0, %v304_v62 }
  0xfe   :  { %v1215_v36 = vpop.f32.mrf.mxu0  ;;  %v381_v9 = vmul.f32 1.442695, %v360_v4 }
  0xff   :  { %v399_v38 = vmul.f32 1.442695, %v369_v32  ;;  %v352_v39 = vadd.f32 %v1215_v36, %v160_v8  ;;  %v367_v42 = vsub.f32 0.0, %v341_v35  ;;  %v90_v8 = vpop.permute.xlu1 %89  ;;  %v377_v17 = vmul.f32 1.442695, %v358_v5 }
 0x100   :  { %v343_v43 = vpop.f32.mrf.mxu0  ;;  %v296_v13 = vadd.f32 %v1694_v11, %v90_v8 }
 0x101   :  { %v370_v45 = vsub.f32 0.0, %v352_v39  ;;  %v344_v46 = vadd.f32 %v343_v43, %v150_v10  ;;  %1341 = vpow2.f32 %v399_v38  ;;  %v395_v49 = vmul.f32 1.442695, %v367_v42 }
 0x102   :  { %v359_v10 = vsub.f32 0.0, %v309_v0  ;;  %v356_v20 = vsub.f32 0.0, %v296_v13 }
 0x103   :  { %v401_v51 = vmul.f32 1.442695, %v370_v45  ;;  %v368_v52 = vsub.f32 0.0, %v344_v46  ;;  %1343 = vpow2.f32 %v395_v49 }
 0x104   :  { %1345 = vpow2.f32 %v393_v44  ;;  %v379_v18 = vmul.f32 1.442695, %v359_v10  ;;  %v373_v28 = vmul.f32 1.442695, %v356_v20  ;;  %v1331_v20 = vld [vmem:[%s1779_s3 + $0x38] sm:$0xff]  }
 0x105   :  { %v397_v57 = vmul.f32 1.442695, %v368_v52  ;;  %1347 = vpow2.f32 %v401_v51 }
 0x106   :  { %1349 = vpow2.f32 %v391_v50 }
 0x107   :  { %1351 = vpow2.f32 %v397_v57 }
 0x108   :  { %1353 = vpow2.f32 %v389_v61 }
 0x109   :  { %1355 = vpow2.f32 %v387_v1 }
 0x10a   :  { %1357 = vpow2.f32 %v385_v3 }
 0x10b   :  { %1359 = vpow2.f32 %v383_v6 }
 0x10c   :  { %1361 = vpow2.f32 %v375_v12 }
 0x10d   :  { %1363 = vpow2.f32 %v381_v9  ;;  %v1325_v9 = vld [vmem:[%s1779_s3 + $0x8] sm:$0xff]  }
 0x10e   :  { %v1342_v16 = vpop.eup %1341  ;;  %1365 = vpow2.f32 %v377_v17  ;;  %v1328_v17 = vld [vmem:[%s1779_s3 + $0x20] sm:$0xff]  }
 0x10f   :  { %v417_v21 = vadd.f32 1.0, %v1342_v16  ;;  %1367 = vpow2.f32 %v379_v18  ;;  %v1326_v16 = vld [vmem:[%s1779_s3 + $0x10] sm:$0xff]   ;;  %v1329_v18 = vld [vmem:[%s1779_s3 + $0x28] sm:$0xff]  }
 0x110   :  { %v1344_v19 = vpop.eup %1343 }
 0x111   :  { %v1346_v22 = vpop.eup %1345  ;;  %v415_v25 = vadd.f32 1.0, %v1344_v19  ;;  %1369 = vrcp.f32 %v417_v21  ;;  %v1330_v19 = vld [vmem:[%s1779_s3 + $0x30] sm:$0xff]   ;;  %v1332_v21 = vld [vmem:[%s1781_s5] sm:$0xff]  }
 0x112   :  { %v1348_v23 = vpop.eup %1347  ;;  %v414_v7 = vadd.f32 1.0, %v1346_v22  ;;  %1264 = vmatprep.mubr.bf16.mxu0 %v1332_v21 }
 0x113   :  { %v1350_v11 = vpop.eup %1349  ;;  %v418_v26 = vadd.f32 1.0, %v1348_v23 }
 0x114   :  { %v1352_v27 = vpop.eup %1351  ;;  %v413_v32 = vadd.f32 1.0, %v1350_v11  ;;  %v553_v11 = vpop.permute.xlu1 %552 }
 0x115   :  { %1371 = vrcp.f32 %v418_v26  ;;  %v416_v29 = vadd.f32 1.0, %v1352_v27  ;;  %v1354_v30 = vpop.eup %1353  ;;  %v548_v27 = vpop.permute.xlu0 %547 }
 0x116   :  { %1373 = vrcp.f32 %v415_v25  ;;  %v1356_v33 = vpop.eup %1355  ;;  %v412_v34 = vadd.f32 1.0, %v1354_v30 }
 0x117   :  { %1375 = vrcp.f32 %v416_v29  ;;  %v1358_v35 = vpop.eup %1357  ;;  %v411_v36 = vadd.f32 1.0, %v1356_v33 }
 0x118   :  { %1377 = vpow2.f32 %v373_v28  ;;  %v1360_v37 = vpop.eup %1359  ;;  %v410_v39 = vadd.f32 1.0, %v1358_v35  ;;  %v543_v29 = vpop.permute.xlu1 %542 }
 0x119   :  { %1379 = vrcp.f32 %v414_v7  ;;  %v1362_v38 = vpop.eup %1361  ;;  %v409_v42 = vadd.f32 1.0, %v1360_v37 }
 0x11a   :  { %1381 = vpow2.f32 %v371_v31  ;;  %v1364_v40 = vpop.eup %1363  ;;  %v405_v56 = vadd.f32 1.0, %v1362_v38  ;;  %v538_v31 = vpop.permute.xlu0 %537 }
 0x11b   :  { %1383 = vrcp.f32 %v413_v32  ;;  %v1366_v41 = vpop.eup %1365  ;;  %v408_v45 = vadd.f32 1.0, %v1364_v40 }
 0x11c   :  { %1385 = vrcp.f32 %v412_v34  ;;  %v1368_v43 = vpop.eup %1367  ;;  %v406_v52 = vadd.f32 1.0, %v1366_v41  ;;  %v533_v34 = vpop.permute.xlu1 %532 }
 0x11d   :  { %1387 = vrcp.f32 %v411_v36  ;;  %v407_v48 = vadd.f32 1.0, %v1368_v43 }
 0x11e   :  { %v1370_v44 = vpop.eup %1369  ;;  %1389 = vrcp.f32 %v410_v39  ;;  %v528_v36 = vpop.permute.xlu0 %527 }
 0x11f   :  { %1391 = vrcp.f32 %v409_v42 }
 0x120   :  { %1393 = vrcp.f32 %v408_v45  ;;  %v523_v39 = vpop.permute.xlu1 %522 }
 0x121   :  { %1395 = vrcp.f32 %v407_v48 }
 0x122   :  { %v1372_v46 = vpop.eup %1371  ;;  %1397 = vrcp.f32 %v406_v52  ;;  %v518_v42 = vpop.permute.xlu0 %517 }
 0x123   :  { %v1374_v47 = vpop.eup %1373  ;;  %v458_v49 = vpack.c.bf16 %v1372_v46, %v1370_v44  ;;  %1399 = vrcp.f32 %v405_v56 }
 0x124   :  { %v1376_v50 = vpop.eup %1375 }
 0x125   :  { %v1378_v51 = vpop.eup %1377  ;;  %1216 = vmatprep.subr.bf16.mxu1 %v458_v49  ;;  %v457_v53 = vpack.c.bf16 %v1376_v50, %v1374_v47 }
 0x126   :  { %v1380_v54 = vpop.eup %1379  ;;  %1217 = vmatpush3.bf16.msra.mxu1 %v458_v49  ;;  %v404_v58 = vadd.f32 1.0, %v1378_v51  ;;  %v513_v51 = vpop.permute.xlu1 %512 }
 0x127   :  { %v1382_v55 = vpop.eup %1381  ;;  %1218 = vmatprep.subr.bf16.mxu1 %v457_v53  ;;  %v508_v56 = vpop.permute.xlu0 %507 }
 0x128   :  { %v1384_v57 = vpop.eup %1383  ;;  %v403_v61 = vadd.f32 1.0, %v1382_v55  ;;  %1401 = vrcp.f32 %v404_v58 }
 0x129   :  { %v456_v59 = vpack.c.bf16 %v1380_v54, %v1384_v57  ;;  %v1386_v60 = vpop.eup %1385 }
 0x12a   :  { %1219 = vmatpush3.bf16.msra.mxu1 %v457_v53  ;;  %v1388_v62 = vpop.eup %1387  ;;  %1403 = vrcp.f32 %v403_v61 }
 0x12b   :  { %1220 = vmatprep.subr.bf16.mxu1 %v456_v59  ;;  %v455_v63 = vpack.c.bf16 %v1386_v60, %v1388_v62  ;;  %v1390_v0 = vpop.eup %1389  ;;  %v503_v62 = vpop.permute.xlu1 %502 }
 0x12c   :  { %v1392_v1 = vpop.eup %1391 }
 0x12d   :  { %v454_v2 = vpack.c.bf16 %v1390_v0, %v1392_v1  ;;  %v1394_v3 = vpop.eup %1393 }
 0x12e   :  { %1221 = vmatpush3.bf16.msra.mxu1 %v456_v59  ;;  %v1396_v4 = vpop.eup %1395 }
 0x12f   :  { %1222 = vmatprep.subr.bf16.mxu1 %v455_v63  ;;  %v453_v5 = vpack.c.bf16 %v1394_v3, %v1396_v4  ;;  %v1398_v8 = vpop.eup %1397 }
 0x130   :  { %v1400_v6 = vpop.eup %1399 }
 0x131   :  { %v452_v10 = vpack.c.bf16 %v1398_v8, %v1400_v6 }
 0x132   :  { %1223 = vmatpush3.bf16.msra.mxu1 %v455_v63 }
 0x133   :  { %1224 = vmatprep.subr.bf16.mxu1 %v454_v2 }
 0x135   :  { %v1402_v12 = vpop.eup %1401 }
 0x136   :  { %1225 = vmatpush3.bf16.msra.mxu1 %v454_v2  ;;  %v498_v2 = vpop.permute.xlu0 %497 }
 0x137   :  { %1226 = vmatprep.subr.bf16.mxu1 %v453_v5  ;;  %v1404_v13 = vpop.eup %1403 }
 0x138   :  { %v451_v15 = vpack.c.bf16 %v1402_v12, %v1404_v13 }
 0x13a   :  { %1227 = vmatpush3.bf16.msra.mxu1 %v453_v5 }
 0x13b   :  { %1228 = vmatprep.subr.bf16.mxu1 %v452_v10 }
 0x13e   :  { %1229 = vmatpush3.bf16.msra.mxu1 %v452_v10  ;;  %v493_v10 = vpop.permute.xlu1 %492 }
 0x13f   :  { %1230 = vmatprep.subr.bf16.mxu1 %v451_v15 }
 0x142   :  { %1231 = vmatpush3.bf16.msra.mxu1 %v451_v15  ;;  %v488_v15 = vpop.permute.xlu0 %487 }
 0x145   :  { %1233 = vmatmul.mubr.bf16.vlgmr.msra.gmra.mxu1 %v1325_v9 }
 0x146   :  { %1236 = vmatprep.mubr.bf16.mxu1 %v1326_v16 }
 0x14d   :  { %1237 = vmatmul.mubr.bf16.gmra.mxu1 %v1327_v14 }
 0x14e   :  { %1240 = vmatprep.mubr.bf16.mxu1 %v1328_v17 }
 0x155   :  { %1241 = vmatmul.mubr.bf16.gmra.mxu1 %v1329_v18 }
 0x156   :  { %1244 = vmatprep.mubr.bf16.mxu1 %v1330_v19  ;;  %v483_v19 = vpop.permute.xlu1 %482 }
 0x15d   :  { %1245 = vmatmul.mubr.bf16.gmra.mxu1 %v1331_v20 }
 0x205   :  { %v1722_v22 = vpop.f32.mrf.mxu1 }
 0x206   :  { %v646_v17 = vadd.f32 %v1722_v22, %v488_v15  ;;  %v1333_v22 = vld [vmem:[%s1781_s5 + $0x8] sm:$0xff]  }
 0x207   :  { %v1724_v23 = vpop.f32.mrf.mxu1 }
 0x209   :  { %v1235_v24 = vpop.f32.mrf.mxu1 }
 0x20a   :  { %v649_v9 = vadd.f32 %v1235_v24, %v493_v10 }
 0x20b   :  { %v1726_v25 = vpop.f32.mrf.mxu1 }
 0x20c   :  { %v703_v20 = vmax.f32 %v649_v9, 0.0  ;;  %v641_v21 = vadd.f32 %v1726_v25, %v483_v19  ;;  %v1334_v25 = vld [vmem:[%s1781_s5 + $0x10] sm:$0xff]  }
 0x20d   :  { %v1238_v26 = vpop.f32.mrf.mxu1 }
 0x20e   :  { %v662_v3 = vadd.f32 %v1238_v26, %v508_v56  ;;  %v478_v26 = vpop.permute.xlu0 %477  ;;  %v701_v24 = vmax.f32 %v641_v21, 0.0 }
 0x20f   :  { %v653_v28 = vpop.f32.mrf.mxu1 }
 0x210   :  { %v706_v12 = vmax.f32 %v662_v3, 0.0  ;;  %v654_v13 = vadd.f32 %v653_v28, %v498_v2  ;;  %v638_v28 = vadd.f32 %v1724_v23, %v478_v26  ;;  %v1335_v23 = vld [vmem:[%s1781_s5 + $0x18] sm:$0xff]  }
 0x211   :  { %v1239_v7 = vpop.f32.mrf.mxu1 }
 0x212   :  { %v665_v63 = vadd.f32 %v1239_v7, %v513_v51  ;;  %v704_v18 = vmax.f32 %v654_v13, 0.0 }
 0x213   :  { %v656_v30 = vpop.f32.mrf.mxu1 }
 0x214   :  { %v707_v5 = vmax.f32 %v665_v63, 0.0  ;;  %v657_v8 = vadd.f32 %v656_v30, %v503_v62 }
 0x215   :  { %v1242_v32 = vpop.f32.mrf.mxu1 }
 0x216   :  { %v678_v52 = vadd.f32 %v1242_v32, %v528_v36  ;;  %v735_v16 = vpack.c.bf16 %v707_v5, %v706_v12  ;;  %v705_v14 = vmax.f32 %v657_v8, 0.0  ;;  %v1337_v32 = vld [vmem:[%s1781_s5 + $0x28] sm:$0xff]  }
 0x217   :  { %v669_v33 = vpop.f32.mrf.mxu1 }
 0x218   :  { %v710_v60 = vmax.f32 %v678_v52, 0.0  ;;  %v670_v61 = vadd.f32 %v669_v33, %v518_v42  ;;  %v1338_v33 = vld [vmem:[%s1781_s5 + $0x30] sm:$0xff]  }
 0x219   :  { %v1243_v35 = vpop.f32.mrf.mxu1 }
 0x21a   :  { %v681_v47 = vadd.f32 %v1243_v35, %v533_v34  ;;  %v708_v4 = vmax.f32 %v670_v61, 0.0  ;;  %v1339_v34 = vld [vmem:[%s1781_s5 + $0x38] sm:$0xff]   ;;  %v1436_v35 = vmov 0.0  }
 0x21b   :  { %v672_v37 = vpop.f32.mrf.mxu1  ;;  %1280 = vmatprep.subr.bf16.mxu1 %v1436_v35  ;;  %1296 = vmatprep.mubr.msk.bf16.mxu1 %vm1437_vm0, %v1436_v35 }
 0x21c   :  { %v711_v57 = vmax.f32 %v681_v47, 0.0  ;;  %v673_v58 = vadd.f32 %v672_v37, %v523_v39 }
 0x21d   :  { %v1246_v38 = vpop.f32.mrf.mxu1 }
 0x21e   :  { %v694_v41 = vadd.f32 %v1246_v38, %v548_v27  ;;  %v737_v0 = vpack.c.bf16 %v711_v57, %v710_v60  ;;  %v709_v1 = vmax.f32 %v673_v58, 0.0  ;;  %v702_v27 = vmax.f32 %v646_v17, 0.0 }
 0x21f   :  { %v685_v40 = vpop.f32.mrf.mxu1 }
 0x220   :  { %v686_v44 = vadd.f32 %v685_v40, %v538_v31  ;;  %v714_v48 = vmax.f32 %v694_v41, 0.0  ;;  %v736_v6 = vpack.c.bf16 %v709_v1, %v708_v4  ;;  %v733_v7 = vpack.c.bf16 %v703_v20, %v702_v27  ;;  %v1336_v31 = vld [vmem:[%s1781_s5 + $0x20] sm:$0xff]   ;;  %v834_v41 = vpop.permute.xlu1 %833 }
 0x221   :  { %v1247_v43 = vpop.f32.mrf.mxu1 }
 0x222   :  { %v697_v45 = vadd.f32 %v1247_v43, %v553_v11  ;;  %v712_v53 = vmax.f32 %v686_v44, 0.0  ;;  %v734_v11 = vpack.c.bf16 %v705_v14, %v704_v18  ;;  %v829_v43 = vpop.permute.xlu0 %828 }
 0x223   :  { %v688_v46 = vpop.f32.mrf.mxu1 }
 0x224   :  { %v715_v49 = vmax.f32 %v697_v45, 0.0  ;;  %v689_v50 = vadd.f32 %v688_v46, %v543_v29  ;;  %v700_v29 = vmax.f32 %v638_v28, 0.0  ;;  %v824_v46 = vpop.permute.xlu1 %823 }
 0x226   :  { %v739_v54 = vpack.c.bf16 %v715_v49, %v714_v48  ;;  %v713_v55 = vmax.f32 %v689_v50, 0.0  ;;  %v732_v30 = vpack.c.bf16 %v701_v24, %v700_v29  ;;  %v819_v48 = vpop.permute.xlu0 %818 }
 0x228   :  { %v738_v59 = vpack.c.bf16 %v713_v55, %v712_v53  ;;  %1248 = vmatprep.subr.bf16.mxu0 %v739_v54  ;;  %v814_v51 = vpop.permute.xlu1 %813 }
 0x229   :  { %1249 = vmatpush3.bf16.msra.mxu0 %v739_v54 }
 0x22a   :  { %1250 = vmatprep.subr.bf16.mxu0 %v738_v59  ;;  %v809_v53 = vpop.permute.xlu0 %808 }
 0x22c   :  { %v804_v57 = vpop.permute.xlu1 %803 }
 0x22d   :  { %1251 = vmatpush3.bf16.msra.mxu0 %v738_v59 }
 0x22e   :  { %1252 = vmatprep.subr.bf16.mxu0 %v737_v0  ;;  %v799_v60 = vpop.permute.xlu0 %798 }
 0x230   :  { %v794_v5 = vpop.permute.xlu1 %793 }
 0x231   :  { %1253 = vmatpush3.bf16.msra.mxu0 %v737_v0 }
 0x232   :  { %1254 = vmatprep.subr.bf16.mxu0 %v736_v6  ;;  %v789_v10 = vpop.permute.xlu0 %788 }
 0x234   :  { %v784_v14 = vpop.permute.xlu1 %783 }
 0x235   :  { %1255 = vmatpush3.bf16.msra.mxu0 %v736_v6 }
 0x236   :  { %1256 = vmatprep.subr.bf16.mxu0 %v735_v16  ;;  %v779_v20 = vpop.permute.xlu0 %778 }
 0x239   :  { %1257 = vmatpush3.bf16.msra.mxu0 %v735_v16 }
 0x23a   :  { %1258 = vmatprep.subr.bf16.mxu0 %v734_v11 }
 0x23d   :  { %1259 = vmatpush3.bf16.msra.mxu0 %v734_v11 }
 0x23e   :  { %1260 = vmatprep.subr.bf16.mxu0 %v733_v7 }
 0x241   :  { %1261 = vmatpush3.bf16.msra.mxu0 %v733_v7  ;;  %v774_v7 = vpop.permute.xlu1 %773 }
 0x242   :  { %1262 = vmatprep.subr.bf16.mxu0 %v732_v30 }
 0x245   :  { %1263 = vmatpush3.bf16.msra.mxu0 %v732_v30  ;;  %v769_v30 = vpop.permute.xlu0 %768 }
 0x248   :  { %1265 = vmatmul.mubr.bf16.vlgmr.msra.gmra.mxu0 %v1333_v22 }
 0x249   :  { %1268 = vmatprep.mubr.bf16.mxu0 %v1334_v25 }
 0x250   :  { %1269 = vmatmul.mubr.bf16.gmra.mxu0 %v1335_v23 }
 0x251   :  { %1272 = vmatprep.mubr.bf16.mxu0 %v1336_v31 }
 0x258   :  { %1273 = vmatmul.mubr.bf16.gmra.mxu0 %v1337_v32 }
 0x259   :  { %1276 = vmatprep.mubr.bf16.mxu0 %v1338_v33  ;;  %v764_v33 = vpop.permute.xlu1 %763 }
 0x260   :  { %1277 = vmatmul.mubr.bf16.gmra.mxu0 %v1339_v34 }
 0x308   :  { %v1754_v36 = vpop.f32.mrf.mxu0 }
 0x309   :  { %v927_v31 = vadd.f32 %v1754_v36, %v769_v30 }
 0x30a   :  { %v1756_v37 = vpop.f32.mrf.mxu0 }
 0x30c   :  { %v1267_v38 = vpop.f32.mrf.mxu0 }
 0x30d   :  { %v930_v22 = vadd.f32 %v1267_v38, %v774_v7 }
 0x30e   :  { %v1758_v39 = vpop.f32.mrf.mxu0 }
 0x30f   :  { %v984_v34 = vmax.f32 %v930_v22, 0.0 }
 0x310   :  { %v1270_v40 = vpop.f32.mrf.mxu0 }
 0x311   :  { %v943_v21 = vadd.f32 %v1270_v40, %v789_v10  ;;  %v922_v40 = vadd.f32 %v1758_v39, %v764_v33 }
 0x312   :  { %v934_v42 = vpop.f32.mrf.mxu0 }
 0x313   :  { %v987_v24 = vmax.f32 %v943_v21, 0.0  ;;  %v935_v29 = vadd.f32 %v934_v42, %v779_v20  ;;  %v983_v42 = vmax.f32 %v927_v31, 0.0 }
 0x314   :  { %v1271_v44 = vpop.f32.mrf.mxu0 }
 0x315   :  { %v946_v17 = vadd.f32 %v1271_v44, %v794_v5  ;;  %v985_v32 = vmax.f32 %v935_v29, 0.0  ;;  %v1000_v38 = vpack.c.bf16 %v984_v34, %v983_v42 }
 0x316   :  { %v937_v45 = vpop.f32.mrf.mxu0 }
 0x317   :  { %v988_v26 = vmax.f32 %v946_v17, 0.0  ;;  %v938_v27 = vadd.f32 %v937_v45, %v784_v14  ;;  %v982_v45 = vmax.f32 %v922_v40, 0.0 }
 0x318   :  { %v1274_v47 = vpop.f32.mrf.mxu0 }
 0x319   :  { %v959_v8 = vadd.f32 %v1274_v47, %v809_v53  ;;  %v1002_v25 = vpack.c.bf16 %v988_v26, %v987_v24  ;;  %v986_v23 = vmax.f32 %v938_v27, 0.0  ;;  %v1340_v47 = vld [vmem:[%s1783_s7] sm:$0xff]   ;;  %s1438_s7 = smov [#allocation2]  }
 0x31a   :  { %v950_v49 = vpop.f32.mrf.mxu0  ;;  %s1083_s2 = sshll.u32 %s1438_s7, 4  ;;  %s1084_s2 = int_to_ptr.vmem [resolvable:$true] %s1083_s2 }
 0x31b   :  { %v991_v9 = vmax.f32 %v959_v8, 0.0  ;;  %v951_v16 = vadd.f32 %v950_v49, %v799_v60  ;;  %s1413_s28 = scalar_lea.vmem %s1084_s2, 256  ;;  %p1418_p1 = scmp.lt.s32.totalorder %s1084_s2, %s1084_s2 }
 0x31c   :  { %v1275_v50 = vpop.f32.mrf.mxu0  ;;  %p1414_p0 = scmp.ne.s32.totalorder %s1084_s2, %s1413_s28  ;;  %p1419_p2 = scmp.lt.s32.totalorder %s1413_s28, %s1413_s28 }
 0x31d   :  { %v962_v2 = vadd.f32 %v1275_v50, %v814_v51  ;;  %v989_v11 = vmax.f32 %v951_v16, 0.0  ;;  %v1017_v51 = vpop.permute.xlu1 %1016 }
 0x31e   :  { %v953_v52 = vpop.f32.mrf.mxu0  ;;  %p1420_p3 = por %p1419_p2, %p1418_p1 }
 0x31f   :  { %v992_v12 = vmax.f32 %v962_v2, 0.0  ;;  %v954_v13 = vadd.f32 %v953_v52, %v804_v57 }
 0x320   :  { %v1278_v54 = vpop.f32.mrf.mxu0  ;;  %p1421_p4 = pnand %p1420_p3, %p1414_p0 }
 0x321   :  { %v975_v56 = vadd.f32 %v1278_v54, %v829_v43  ;;  %v1004_v18 = vpack.c.bf16 %v992_v12, %v991_v9  ;;  %v990_v19 = vmax.f32 %v954_v13, 0.0  ;;  %v759_v43 = vpop.permute.xlu0 %758 }
 0x322   :  { %v966_v55 = vpop.f32.mrf.mxu0  ;;  %v919_v44 = vadd.f32 %v1756_v37, %v759_v43 }
 0x323   :  { %v995_v62 = vmax.f32 %v975_v56, 0.0  ;;  %v967_v63 = vadd.f32 %v966_v55, %v819_v48  ;;  %v1003_v28 = vpack.c.bf16 %v990_v19, %v989_v11 }
 0x324   :  { %v1279_v58 = vpop.f32.mrf.mxu0 }
 0x325   :  { %v978_v59 = vadd.f32 %v1279_v58, %v834_v41  ;;  %v993_v6 = vmax.f32 %v967_v63, 0.0  ;;  %v1001_v41 = vpack.c.bf16 %v986_v23, %v985_v32  ;;  %v1012_v39 = vpop.permute.xlu0 %1011 }
 0x326   :  { %v969_v61 = vpop.f32.mrf.mxu0 }
 0x327   :  { %v996_v0 = vmax.f32 %v978_v59, 0.0  ;;  %v970_v1 = vadd.f32 %v969_v61, %v824_v46  ;;  %v981_v46 = vmax.f32 %v919_v44, 0.0 }
 0x329   :  { %v1006_v3 = vpack.c.bf16 %v996_v0, %v995_v62  ;;  %v994_v4 = vmax.f32 %v970_v1, 0.0  ;;  %v999_v36 = vpack.c.bf16 %v982_v45, %v981_v46 }
 0x32b   :  { %1281 = vmatpush3.bf16.msra.mxu1 %v1006_v3  ;;  %v1005_v15 = vpack.c.bf16 %v994_v4, %v993_v6 }
 0x32c   :  { %1282 = vmatprep.subr.bf16.mxu1 %v1436_v35 }
 0x32f   :  { %1283 = vmatpush3.bf16.msra.mxu1 %v1005_v15 }
 0x330   :  { %1284 = vmatprep.subr.bf16.mxu1 %v1436_v35 }
 0x333   :  { %1285 = vmatpush3.bf16.msra.mxu1 %v1004_v18 }
 0x334   :  { %1286 = vmatprep.subr.bf16.mxu1 %v1436_v35 }
 0x337   :  { %1287 = vmatpush3.bf16.msra.mxu1 %v1003_v28 }
 0x338   :  { %1288 = vmatprep.subr.bf16.mxu1 %v1436_v35 }
 0x33b   :  { %1289 = vmatpush3.bf16.msra.mxu1 %v1002_v25 }
 0x33c   :  { %1290 = vmatprep.subr.bf16.mxu1 %v1436_v35 }
 0x33f   :  { %1291 = vmatpush3.bf16.msra.mxu1 %v1001_v41 }
 0x340   :  { %1292 = vmatprep.subr.bf16.mxu1 %v1436_v35 }
 0x343   :  { %1293 = vmatpush3.bf16.msra.mxu1 %v1000_v38 }
 0x344   :  { %1294 = vmatprep.subr.bf16.mxu1 %v1436_v35 }
 0x347   :  { %1295 = vmatpush3.bf16.msra.mxu1 %v999_v36 }
 0x34a   :  { %1297 = vmatmul.mubr.bf16.vlgmr.msra.gmra.mxu1 %v1340_v47 }
 0x40a   :  { %v1059_v48 = vpop.f32.mrf.mxu1 }
 0x40b   :  { %v1060_v49 = vadd.f32 %v1059_v48, %v1012_v39 }
 0x40c   :  { %v1298_v37 = vpop.f32.mrf.mxu1 }
 0x40d   :  { %v1066_v50 = vsub.f32 0.0, %v1060_v49 }
 0x40e   :  { %v1062_v52 = vpop.f32.mrf.mxu1 }
 0x40f   :  { %v1068_v53 = vmul.f32 1.442695, %v1066_v50  ;;  %v1063_v54 = vadd.f32 %v1062_v52, %v1017_v51 }
 0x410   :  { %v1299_v55 = vpop.f32.mrf.mxu1 }
 0x411   :  { %1405 = vpow2.f32 %v1068_v53  ;;  %v1067_v56 = vsub.f32 0.0, %v1063_v54 }
 0x413   :  { %v1070_v35 = vmul.f32 1.442695, %v1067_v56 }
 0x415   :  { %1407 = vpow2.f32 %v1070_v35 }
 0x41e   :  { %v1406_v57 = vpop.eup %1405 }
 0x41f   :  { %v1072_v58 = vadd.f32 1.0, %v1406_v57 }
 0x421   :  { %1409 = vrcp.f32 %v1072_v58 }
 0x422   :  { %v1408_v59 = vpop.eup %1407 }
 0x423   :  { %v1073_v60 = vadd.f32 1.0, %v1408_v59 }
 0x425   :  { %1411 = vrcp.f32 %v1073_v60 }
 0x42e   :  { %v1410_v61 = vpop.eup %1409 }
 0x42f   :  { %1076 = vst [vmem:[#allocation2] sm:$0xff] %v1410_v61 }
 0x432   :  { %v1412_v62 = vpop.eup %1411 }
 0x433   :  { %1077 = vst [vmem:[#allocation2 + $0x8] sm:$0xff] %v1412_v62 }
 0x434   :  { %1424 = shalt.err (!%p1421_p4)
}
 0x435   :  { %s1439_s29 = smov 128   ;;  %s1440_s1 = smov 8  }
 0x436   :  { %1089 = dma.vmem_to_hbm [thread:$0]  %s1084_s2, 256, %s1785_s9, [#allocation3], %s1439_s29, %s1439_s29, %s1440_s1  }
 0x437   :  { %1433 = dma.done.wait [#allocation3], 256  }
 0x438   :  { %1434 = vsyncadd [#allocation3], 4294967040 }
 0x439   :  { %1093 = vsyncpa [#allocation3], 1 }

// kernel: tpu_custom_call.1
= control target key start
LH: loop header
LB: loop body
LE: loop exit
PB: predicated region body
PF: predicated region fallthrough
CT: control target
= control target key end

     0   :  { %v1435_v2 = vmov 0   ;;  %s1776_s0 = inlined_call_operand.vmem [shape: bf16[128,128], index: 0, kind: input, shape index: {}]   ;;  %s1777_s1 = inlined_call_operand.vmem [shape: bf16[128,128], index: 1, kind: input, shape index: {}]   ;;  %s1778_s2 = inlined_call_operand.vmem [shape: f32[128,1], index: 2, kind: input, shape index: {}]   ;;  %s1779_s3 = inlined_call_operand.vmem [shape: bf16[128,128], index: 3, kind: input, shape index: {}]   ;;  %s1780_s4 = inlined_call_operand.vmem [shape: f32[128,1], index: 4, kind: input, shape index: {}]   ;;  %s1781_s5 = inlined_call_operand.vmem [shape: bf16[128,128], index: 5, kind: input, shape index: {}]   ;;  %s1782_s6 = inlined_call_operand.vmem [shape: f32[128,1], index: 6, kind: input, shape index: {}]   ;;  %s1783_s7 = inlined_call_operand.vmem [shape: bf16[16,128], index: 7, kind: input, shape index: {}]   ;;  %s1784_s8 = inlined_call_operand.vmem [shape: f32[16,1], index: 8, kind: input, shape index: {}]   ;;  %s1785_s9 = inlined_call_operand.hbm [shape: f32[16,128], index: 9, kind: output, shape index: {}]  }
   0x1   :  { %v1308_v0 = vld [vmem:[%s1776_s0 + $0x38] sm:$0xff]   ;;  %v1309_v1 = vld [vmem:[%s1776_s0 + $0x30] sm:$0xff]   ;;  %1306 = vset.pattern.permute.xlu0 %v1435_v2  ;;  %1307 = vset.pattern.permute.xlu1 %v1435_v2  ;;  %v1310_v3 = vld [vmem:[%s1776_s0 + $0x28] sm:$0xff]  }
   0x2   :  { %1184 = vmatprep.subr.bf16.mxu0 %v1308_v0  ;;  %v1311_v4 = vld [vmem:[%s1776_s0 + $0x20] sm:$0xff]   ;;  %v80_v5 = vld [vmem:[%s1778_s2 + $0x70] sm:$0xff]  ;;  %v81_v7 = vld [vmem:[%s1778_s2 + $0x78] sm:$0xff] }
   0x3   :  { %1185 = vmatpush3.bf16.msra.mxu0 %v1308_v0  ;;  %154 = vperm.xlu0 %1306, %v80_v5   ;;  %v1316_v6 = vld [vmem:[%s1777_s1] sm:$0xff]   ;;  %v1312_v9 = vld [vmem:[%s1776_s0 + $0x18] sm:$0xff]   ;;  %v79_v10 = vld [vmem:[%s1778_s2 + $0x68] sm:$0xff] }
   0x4   :  { %1186 = vmatprep.subr.bf16.mxu0 %v1309_v1  ;;  %v78_v8 = vld [vmem:[%s1778_s2 + $0x60] sm:$0xff]  ;;  %1200 = vmatprep.mubr.bf16.mxu0 %v1316_v6  ;;  %v76_v11 = vld [vmem:[%s1778_s2 + $0x50] sm:$0xff]  ;;  %v77_v13 = vld [vmem:[%s1778_s2 + $0x58] sm:$0xff] }
   0x5   :  { %144 = vperm.xlu1 %1307, %v78_v8   ;;  %v1313_v12 = vld [vmem:[%s1776_s0 + $0x10] sm:$0xff]   ;;  %v74_v14 = vld [vmem:[%s1778_s2 + $0x40] sm:$0xff]  ;;  %v1314_v15 = vld [vmem:[%s1776_s0 + $0x8] sm:$0xff]  }
   0x6   :  { %v75_v16 = vld [vmem:[%s1778_s2 + $0x48] sm:$0xff]  ;;  %v72_v17 = vld [vmem:[%s1778_s2 + $0x30] sm:$0xff]  ;;  %v1315_v18 = vld [vmem:[%s1776_s0] sm:$0xff]  }
   0x7   :  { %1187 = vmatpush3.bf16.msra.mxu0 %v1309_v1  ;;  %159 = vperm.xlu0 %1306, %v81_v7   ;;  %v73_v19 = vld [vmem:[%s1778_s2 + $0x38] sm:$0xff]  ;;  %v70_v20 = vld [vmem:[%s1778_s2 + $0x20] sm:$0xff]  ;;  %v71_v21 = vld [vmem:[%s1778_s2 + $0x28] sm:$0xff] }
   0x8   :  { %1188 = vmatprep.subr.bf16.mxu0 %v1310_v3  ;;  %v1317_v22 = vld [vmem:[%s1777_s1 + $0x8] sm:$0xff]   ;;  %v68_v23 = vld [vmem:[%s1778_s2 + $0x10] sm:$0xff]  ;;  %v69_v25 = vld [vmem:[%s1778_s2 + $0x18] sm:$0xff] }
   0x9   :  { %149 = vperm.xlu1 %1307, %v79_v10   ;;  %v1318_v24 = vld [vmem:[%s1777_s1 + $0x10] sm:$0xff]   ;;  %v66_v26 = vld [vmem:[%s1778_s2] sm:$0xff]  ;;  %v67_v27 = vld [vmem:[%s1778_s2 + $0x8] sm:$0xff] }
   0xa   :  { %v1319_v28 = vld [vmem:[%s1777_s1 + $0x18] sm:$0xff]   ;;  %v473_v29 = vld [vmem:[%s1780_s4 + $0x70] sm:$0xff]  ;;  %v1320_v30 = vld [vmem:[%s1777_s1 + $0x20] sm:$0xff]  }
   0xb   :  { %1189 = vmatpush3.bf16.msra.mxu0 %v1310_v3  ;;  %134 = vperm.xlu0 %1306, %v76_v11   ;;  %v474_v31 = vld [vmem:[%s1780_s4 + $0x78] sm:$0xff]  ;;  %v471_v32 = vld [vmem:[%s1780_s4 + $0x60] sm:$0xff] }
   0xc   :  { %1190 = vmatprep.subr.bf16.mxu0 %v1311_v4 }
   0xd   :  { %139 = vperm.xlu1 %1307, %v77_v13  }
   0xf   :  { %1191 = vmatpush3.bf16.msra.mxu0 %v1311_v4  ;;  %124 = vperm.xlu0 %1306, %v74_v14  }
  0x10   :  { %1192 = vmatprep.subr.bf16.mxu0 %v1312_v9 }
  0x11   :  { %129 = vperm.xlu1 %1307, %v75_v16  }
  0x13   :  { %1193 = vmatpush3.bf16.msra.mxu0 %v1312_v9  ;;  %114 = vperm.xlu0 %1306, %v72_v17  }
  0x14   :  { %1194 = vmatprep.subr.bf16.mxu0 %v1313_v12 }
  0x15   :  { %119 = vperm.xlu1 %1307, %v73_v19  }
  0x17   :  { %1195 = vmatpush3.bf16.msra.mxu0 %v1313_v12  ;;  %104 = vperm.xlu0 %1306, %v70_v20  }
  0x18   :  { %1196 = vmatprep.subr.bf16.mxu0 %v1314_v15 }
  0x19   :  { %109 = vperm.xlu1 %1307, %v71_v21  }
  0x1b   :  { %1197 = vmatpush3.bf16.msra.mxu0 %v1314_v15  ;;  %94 = vperm.xlu0 %1306, %v68_v23  }
  0x1c   :  { %1198 = vmatprep.subr.bf16.mxu0 %v1315_v18 }
  0x1d   :  { %99 = vperm.xlu1 %1307, %v69_v25  }
  0x1f   :  { %1199 = vmatpush3.bf16.msra.mxu0 %v1315_v18  ;;  %84 = vperm.xlu0 %1306, %v66_v26  }
  0x21   :  { %89 = vperm.xlu1 %1307, %v67_v27  }
  0x22   :  { %1201 = vmatmul.mubr.bf16.vlgmr.msra.gmra.mxu0 %v1317_v22 }
  0x23   :  { %1204 = vmatprep.mubr.bf16.mxu0 %v1318_v24  ;;  %547 = vperm.xlu0 %1306, %v473_v29  }
  0x25   :  { %552 = vperm.xlu1 %1307, %v474_v31  }
  0x2a   :  { %1205 = vmatmul.mubr.bf16.gmra.mxu0 %v1319_v28 }
  0x2b   :  { %1208 = vmatprep.mubr.bf16.mxu0 %v1320_v30 }
  0x2c   :  { %14 = vsyncpa [#allocation3], 0  ;;  %537 = vperm.xlu0 %1306, %v471_v32   ;;  %v472_v33 = vld [vmem:[%s1780_s4 + $0x68] sm:$0xff]  ;;  %v469_v35 = vld [vmem:[%s1780_s4 + $0x50] sm:$0xff]  ;;  %vm1437_vm0 = vmmov 0  }
  0x2d   :  { %v1321_v34 = vld [vmem:[%s1777_s1 + $0x28] sm:$0xff]   ;;  %v1322_v36 = vld [vmem:[%s1777_s1 + $0x30] sm:$0xff]   ;;  %542 = vperm.xlu1 %1307, %v472_v33   ;;  %v470_v37 = vld [vmem:[%s1780_s4 + $0x58] sm:$0xff] }
  0x2e   :  { %v467_v38 = vld [vmem:[%s1780_s4 + $0x40] sm:$0xff]  ;;  %v468_v39 = vld [vmem:[%s1780_s4 + $0x48] sm:$0xff]  ;;  %v1323_v40 = vld [vmem:[%s1777_s1 + $0x38] sm:$0xff]  }
  0x2f   :  { %v465_v41 = vld [vmem:[%s1780_s4 + $0x30] sm:$0xff]  ;;  %v466_v42 = vld [vmem:[%s1780_s4 + $0x38] sm:$0xff]  ;;  %v463_v43 = vld [vmem:[%s1780_s4 + $0x20] sm:$0xff] }
  0x30   :  { %527 = vperm.xlu0 %1306, %v469_v35   ;;  %v464_v44 = vld [vmem:[%s1780_s4 + $0x28] sm:$0xff]  ;;  %v461_v45 = vld [vmem:[%s1780_s4 + $0x10] sm:$0xff]  ;;  %v462_v46 = vld [vmem:[%s1780_s4 + $0x18] sm:$0xff] }
  0x31   :  { %532 = vperm.xlu1 %1307, %v470_v37   ;;  %v459_v47 = vld [vmem:[%s1780_s4] sm:$0xff]  ;;  %v460_v48 = vld [vmem:[%s1780_s4 + $0x8] sm:$0xff]  ;;  %v754_v49 = vld [vmem:[%s1782_s6 + $0x70] sm:$0xff] }
  0x32   :  { %1209 = vmatmul.mubr.bf16.gmra.mxu0 %v1321_v34  ;;  %v755_v50 = vld [vmem:[%s1782_s6 + $0x78] sm:$0xff]  ;;  %v752_v51 = vld [vmem:[%s1782_s6 + $0x60] sm:$0xff]  ;;  %v753_v52 = vld [vmem:[%s1782_s6 + $0x68] sm:$0xff] }
  0x33   :  { %1212 = vmatprep.mubr.bf16.mxu0 %v1322_v36  ;;  %v750_v53 = vld [vmem:[%s1782_s6 + $0x50] sm:$0xff]  ;;  %v751_v54 = vld [vmem:[%s1782_s6 + $0x58] sm:$0xff]  ;;  %v748_v55 = vld [vmem:[%s1782_s6 + $0x40] sm:$0xff] }
  0x34   :  { %517 = vperm.xlu0 %1306, %v467_v38   ;;  %v749_v56 = vld [vmem:[%s1782_s6 + $0x48] sm:$0xff]  ;;  %v746_v57 = vld [vmem:[%s1782_s6 + $0x30] sm:$0xff]  ;;  %v747_v58 = vld [vmem:[%s1782_s6 + $0x38] sm:$0xff] }
  0x35   :  { %522 = vperm.xlu1 %1307, %v468_v39   ;;  %v744_v59 = vld [vmem:[%s1782_s6 + $0x20] sm:$0xff]  ;;  %v745_v60 = vld [vmem:[%s1782_s6 + $0x28] sm:$0xff]  ;;  %v742_v61 = vld [vmem:[%s1782_s6 + $0x10] sm:$0xff] }
  0x36   :  { %v743_v62 = vld [vmem:[%s1782_s6 + $0x18] sm:$0xff]  ;;  %v740_v63 = vld [vmem:[%s1782_s6] sm:$0xff]  ;;  %v741_v0 = vld [vmem:[%s1782_s6 + $0x8] sm:$0xff] }
  0x37   :  { %v1007_v1 = vld [vmem:[%s1784_s8] sm:$0xff]  ;;  %v1008_v2 = vld [vmem:[%s1784_s8 + $0x8] sm:$0xff] }
  0x38   :  { %507 = vperm.xlu0 %1306, %v465_v41   ;;  %v1324_v3 = vld [vmem:[%s1779_s3] sm:$0xff]  }
  0x39   :  { %512 = vperm.xlu1 %1307, %v466_v42   ;;  %1232 = vmatprep.mubr.bf16.mxu1 %v1324_v3 }
  0x3a   :  { %1213 = vmatmul.mubr.bf16.gmra.mxu0 %v1323_v40 }
  0x3c   :  { %497 = vperm.xlu0 %1306, %v463_v43  }
  0x3d   :  { %502 = vperm.xlu1 %1307, %v464_v44  }
  0x40   :  { %487 = vperm.xlu0 %1306, %v461_v45  }
  0x41   :  { %492 = vperm.xlu1 %1307, %v462_v46  }
  0x44   :  { %477 = vperm.xlu0 %1306, %v459_v47  }
  0x45   :  { %482 = vperm.xlu1 %1307, %v460_v48  }
  0x48   :  { %828 = vperm.xlu0 %1306, %v754_v49  }
  0x49   :  { %833 = vperm.xlu1 %1307, %v755_v50  }
  0x4c   :  { %818 = vperm.xlu0 %1306, %v752_v51  }
  0x4d   :  { %823 = vperm.xlu1 %1307, %v753_v52  }
  0x50   :  { %808 = vperm.xlu0 %1306, %v750_v53  }
  0x51   :  { %813 = vperm.xlu1 %1307, %v751_v54  }
  0x54   :  { %798 = vperm.xlu0 %1306, %v748_v55  }
  0x55   :  { %803 = vperm.xlu1 %1307, %v749_v56  }
  0x58   :  { %788 = vperm.xlu0 %1306, %v746_v57  }
  0x59   :  { %793 = vperm.xlu1 %1307, %v747_v58  }
  0x5c   :  { %778 = vperm.xlu0 %1306, %v744_v59  }
  0x5d   :  { %783 = vperm.xlu1 %1307, %v745_v60  }
  0x60   :  { %768 = vperm.xlu0 %1306, %v742_v61  }
  0x61   :  { %773 = vperm.xlu1 %1307, %v743_v62  }
  0x64   :  { %758 = vperm.xlu0 %1306, %v740_v63  }
  0x65   :  { %763 = vperm.xlu1 %1307, %v741_v0  }
  0x68   :  { %1011 = vperm.xlu0 %1306, %v1007_v1  }
  0x69   :  { %1016 = vperm.xlu1 %1307, %v1008_v2  }
  0x7e   :  { %v155_v4 = vpop.permute.xlu0 %154 }
  0x80   :  { %v145_v5 = vpop.permute.xlu1 %144 }
  0x82   :  { %v160_v8 = vpop.permute.xlu0 %159 }
  0x84   :  { %v150_v10 = vpop.permute.xlu1 %149 }
  0x86   :  { %v135_v13 = vpop.permute.xlu0 %134 }
  0x88   :  { %v140_v15 = vpop.permute.xlu1 %139 }
  0x8a   :  { %v125_v18 = vpop.permute.xlu0 %124 }
  0x8c   :  { %v130_v20 = vpop.permute.xlu1 %129 }
  0x8e   :  { %v115_v23 = vpop.permute.xlu0 %114 }
  0x90   :  { %v120_v26 = vpop.permute.xlu1 %119 }
  0x92   :  { %v105_v33 = vpop.permute.xlu0 %104 }
  0x94   :  { %v110_v40 = vpop.permute.xlu1 %109 }
  0x96   :  { %v95_v53 = vpop.permute.xlu0 %94 }
  0x98   :  { %v100_v58 = vpop.permute.xlu1 %99 }
  0xe2   :  { %v1202_v6 = vpop.f32.mrf.mxu0 }
  0xe3   :  { %v301_v56 = vadd.f32 %v1202_v6, %v95_v53 }
  0xe4   :  { %v1692_v7 = vpop.f32.mrf.mxu0 }
  0xe5   :  { %v357_v2 = vsub.f32 0.0, %v301_v56 }
  0xe6   :  { %v1203_v9 = vpop.f32.mrf.mxu0 }
  0xe7   :  { %v304_v62 = vadd.f32 %v1203_v9, %v100_v58 }
  0xe8   :  { %v1694_v11 = vpop.f32.mrf.mxu0 }
  0xea   :  { %v1206_v12 = vpop.f32.mrf.mxu0 }
  0xeb   :  { %v317_v54 = vadd.f32 %v1206_v12, %v115_v23  ;;  %v375_v12 = vmul.f32 1.442695, %v357_v2 }
  0xec   :  { %v308_v14 = vpop.f32.mrf.mxu0 }
  0xed   :  { %v361_v63 = vsub.f32 0.0, %v317_v54  ;;  %v309_v0 = vadd.f32 %v308_v14, %v105_v33 }
  0xee   :  { %v1207_v16 = vpop.f32.mrf.mxu0 }
  0xef   :  { %v320_v47 = vadd.f32 %v1207_v16, %v120_v26  ;;  %v383_v6 = vmul.f32 1.442695, %v361_v63 }
  0xf0   :  { %v311_v17 = vpop.f32.mrf.mxu0 }
  0xf1   :  { %v362_v59 = vsub.f32 0.0, %v320_v47  ;;  %v312_v60 = vadd.f32 %v311_v17, %v110_v40 }
  0xf2   :  { %v1210_v19 = vpop.f32.mrf.mxu0 }
  0xf3   :  { %v333_v28 = vadd.f32 %v1210_v19, %v135_v13  ;;  %v385_v3 = vmul.f32 1.442695, %v362_v59 }
  0xf4   :  { %v324_v21 = vpop.f32.mrf.mxu0 }
  0xf5   :  { %v365_v37 = vsub.f32 0.0, %v333_v28  ;;  %v325_v41 = vadd.f32 %v324_v21, %v125_v18 }
  0xf6   :  { %v1211_v22 = vpop.f32.mrf.mxu0 }
  0xf7   :  { %v336_v25 = vadd.f32 %v1211_v22, %v140_v15  ;;  %v391_v50 = vmul.f32 1.442695, %v365_v37  ;;  %v363_v55 = vsub.f32 0.0, %v325_v41  ;;  %v85_v15 = vpop.permute.xlu0 %84 }
  0xf8   :  { %v327_v24 = vpop.f32.mrf.mxu0  ;;  %v293_v14 = vadd.f32 %v1692_v7, %v85_v15 }
  0xf9   :  { %v366_v31 = vsub.f32 0.0, %v336_v25  ;;  %v328_v34 = vadd.f32 %v327_v24, %v130_v20  ;;  %v387_v1 = vmul.f32 1.442695, %v363_v55 }
  0xfa   :  { %v1214_v27 = vpop.f32.mrf.mxu0  ;;  %v355_v24 = vsub.f32 0.0, %v293_v14  ;;  %v1327_v14 = vld [vmem:[%s1779_s3 + $0x18] sm:$0xff]  }
  0xfb   :  { %v349_v29 = vadd.f32 %v1214_v27, %v155_v4  ;;  %v393_v44 = vmul.f32 1.442695, %v366_v31  ;;  %v364_v48 = vsub.f32 0.0, %v328_v34  ;;  %v360_v4 = vsub.f32 0.0, %v312_v60 }
  0xfc   :  { %v340_v30 = vpop.f32.mrf.mxu0  ;;  %v371_v31 = vmul.f32 1.442695, %v355_v24 }
  0xfd   :  { %v369_v32 = vsub.f32 0.0, %v349_v29  ;;  %v341_v35 = vadd.f32 %v340_v30, %v145_v5  ;;  %v389_v61 = vmul.f32 1.442695, %v364_v48  ;;  %v358_v5 = vsub.f32 0.0, %v304_v62 }
  0xfe   :  { %v1215_v36 = vpop.f32.mrf.mxu0  ;;  %v381_v9 = vmul.f32 1.442695, %v360_v4 }
  0xff   :  { %v399_v38 = vmul.f32 1.442695, %v369_v32  ;;  %v352_v39 = vadd.f32 %v1215_v36, %v160_v8  ;;  %v367_v42 = vsub.f32 0.0, %v341_v35  ;;  %v90_v8 = vpop.permute.xlu1 %89  ;;  %v377_v17 = vmul.f32 1.442695, %v358_v5 }
 0x100   :  { %v343_v43 = vpop.f32.mrf.mxu0  ;;  %v296_v13 = vadd.f32 %v1694_v11, %v90_v8 }
 0x101   :  { %v370_v45 = vsub.f32 0.0, %v352_v39  ;;  %v344_v46 = vadd.f32 %v343_v43, %v150_v10  ;;  %1341 = vpow2.f32 %v399_v38  ;;  %v395_v49 = vmul.f32 1.442695, %v367_v42 }
 0x102   :  { %v359_v10 = vsub.f32 0.0, %v309_v0  ;;  %v356_v20 = vsub.f32 0.0, %v296_v13 }
 0x103   :  { %v401_v51 = vmul.f32 1.442695, %v370_v45  ;;  %v368_v52 = vsub.f32 0.0, %v344_v46  ;;  %1343 = vpow2.f32 %v395_v49 }
 0x104   :  { %1345 = vpow2.f32 %v393_v44  ;;  %v379_v18 = vmul.f32 1.442695, %v359_v10  ;;  %v373_v28 = vmul.f32 1.442695, %v356_v20  ;;  %v1331_v20 = vld [vmem:[%s1779_s3 + $0x38] sm:$0xff]  }
 0x105   :  { %v397_v57 = vmul.f32 1.442695, %v368_v52  ;;  %1347 = vpow2.f32 %v401_v51 }
 0x106   :  { %1349 = vpow2.f32 %v391_v50 }
 0x107   :  { %1351 = vpow2.f32 %v397_v57 }
 0x108   :  { %1353 = vpow2.f32 %v389_v61 }
 0x109   :  { %1355 = vpow2.f32 %v387_v1 }
 0x10a   :  { %1357 = vpow2.f32 %v385_v3 }
 0x10b   :  { %1359 = vpow2.f32 %v383_v6 }
 0x10c   :  { %1361 = vpow2.f32 %v375_v12 }
 0x10d   :  { %1363 = vpow2.f32 %v381_v9  ;;  %v1325_v9 = vld [vmem:[%s1779_s3 + $0x8] sm:$0xff]  }
 0x10e   :  { %v1342_v16 = vpop.eup %1341  ;;  %1365 = vpow2.f32 %v377_v17  ;;  %v1328_v17 = vld [vmem:[%s1779_s3 + $0x20] sm:$0xff]  }
 0x10f   :  { %v417_v21 = vadd.f32 1.0, %v1342_v16  ;;  %1367 = vpow2.f32 %v379_v18  ;;  %v1326_v16 = vld [vmem:[%s1779_s3 + $0x10] sm:$0xff]   ;;  %v1329_v18 = vld [vmem:[%s1779_s3 + $0x28] sm:$0xff]  }
 0x110   :  { %v1344_v19 = vpop.eup %1343 }
 0x111   :  { %v1346_v22 = vpop.eup %1345  ;;  %v415_v25 = vadd.f32 1.0, %v1344_v19  ;;  %1369 = vrcp.f32 %v417_v21  ;;  %v1330_v19 = vld [vmem:[%s1779_s3 + $0x30] sm:$0xff]   ;;  %v1332_v21 = vld [vmem:[%s1781_s5] sm:$0xff]  }
 0x112   :  { %v1348_v23 = vpop.eup %1347  ;;  %v414_v7 = vadd.f32 1.0, %v1346_v22  ;;  %1264 = vmatprep.mubr.bf16.mxu0 %v1332_v21 }
 0x113   :  { %v1350_v11 = vpop.eup %1349  ;;  %v418_v26 = vadd.f32 1.0, %v1348_v23 }
 0x114   :  { %v1352_v27 = vpop.eup %1351  ;;  %v413_v32 = vadd.f32 1.0, %v1350_v11  ;;  %v553_v11 = vpop.permute.xlu1 %552 }
 0x115   :  { %1371 = vrcp.f32 %v418_v26  ;;  %v416_v29 = vadd.f32 1.0, %v1352_v27  ;;  %v1354_v30 = vpop.eup %1353  ;;  %v548_v27 = vpop.permute.xlu0 %547 }
 0x116   :  { %1373 = vrcp.f32 %v415_v25  ;;  %v1356_v33 = vpop.eup %1355  ;;  %v412_v34 = vadd.f32 1.0, %v1354_v30 }
 0x117   :  { %1375 = vrcp.f32 %v416_v29  ;;  %v1358_v35 = vpop.eup %1357  ;;  %v411_v36 = vadd.f32 1.0, %v1356_v33 }
 0x118   :  { %1377 = vpow2.f32 %v373_v28  ;;  %v1360_v37 = vpop.eup %1359  ;;  %v410_v39 = vadd.f32 1.0, %v1358_v35  ;;  %v543_v29 = vpop.permute.xlu1 %542 }
 0x119   :  { %1379 = vrcp.f32 %v414_v7  ;;  %v1362_v38 = vpop.eup %1361  ;;  %v409_v42 = vadd.f32 1.0, %v1360_v37 }
 0x11a   :  { %1381 = vpow2.f32 %v371_v31  ;;  %v1364_v40 = vpop.eup %1363  ;;  %v405_v56 = vadd.f32 1.0, %v1362_v38  ;;  %v538_v31 = vpop.permute.xlu0 %537 }
 0x11b   :  { %1383 = vrcp.f32 %v413_v32  ;;  %v1366_v41 = vpop.eup %1365  ;;  %v408_v45 = vadd.f32 1.0, %v1364_v40 }
 0x11c   :  { %1385 = vrcp.f32 %v412_v34  ;;  %v1368_v43 = vpop.eup %1367  ;;  %v406_v52 = vadd.f32 1.0, %v1366_v41  ;;  %v533_v34 = vpop.permute.xlu1 %532 }
 0x11d   :  { %1387 = vrcp.f32 %v411_v36  ;;  %v407_v48 = vadd.f32 1.0, %v1368_v43 }
 0x11e   :  { %v1370_v44 = vpop.eup %1369  ;;  %1389 = vrcp.f32 %v410_v39  ;;  %v528_v36 = vpop.permute.xlu0 %527 }
 0x11f   :  { %1391 = vrcp.f32 %v409_v42 }
 0x120   :  { %1393 = vrcp.f32 %v408_v45  ;;  %v523_v39 = vpop.permute.xlu1 %522 }
 0x121   :  { %1395 = vrcp.f32 %v407_v48 }
 0x122   :  { %v1372_v46 = vpop.eup %1371  ;;  %1397 = vrcp.f32 %v406_v52  ;;  %v518_v42 = vpop.permute.xlu0 %517 }
 0x123   :  { %v1374_v47 = vpop.eup %1373  ;;  %v458_v49 = vpack.c.bf16 %v1372_v46, %v1370_v44  ;;  %1399 = vrcp.f32 %v405_v56 }
 0x124   :  { %v1376_v50 = vpop.eup %1375 }
 0x125   :  { %v1378_v51 = vpop.eup %1377  ;;  %1216 = vmatprep.subr.bf16.mxu1 %v458_v49  ;;  %v457_v53 = vpack.c.bf16 %v1376_v50, %v1374_v47 }
 0x126   :  { %v1380_v54 = vpop.eup %1379  ;;  %1217 = vmatpush3.bf16.msra.mxu1 %v458_v49  ;;  %v404_v58 = vadd.f32 1.0, %v1378_v51  ;;  %v513_v51 = vpop.permute.xlu1 %512 }
 0x127   :  { %v1382_v55 = vpop.eup %1381  ;;  %1218 = vmatprep.subr.bf16.mxu1 %v457_v53  ;;  %v508_v56 = vpop.permute.xlu0 %507 }
 0x128   :  { %v1384_v57 = vpop.eup %1383  ;;  %v403_v61 = vadd.f32 1.0, %v1382_v55  ;;  %1401 = vrcp.f32 %v404_v58 }
 0x129   :  { %v456_v59 = vpack.c.bf16 %v1380_v54, %v1384_v57  ;;  %v1386_v60 = vpop.eup %1385 }
 0x12a   :  { %1219 = vmatpush3.bf16.msra.mxu1 %v457_v53  ;;  %v1388_v62 = vpop.eup %1387  ;;  %1403 = vrcp.f32 %v403_v61 }
 0x12b   :  { %1220 = vmatprep.subr.bf16.mxu1 %v456_v59  ;;  %v455_v63 = vpack.c.bf16 %v1386_v60, %v1388_v62  ;;  %v1390_v0 = vpop.eup %1389  ;;  %v503_v62 = vpop.permute.xlu1 %502 }
 0x12c   :  { %v1392_v1 = vpop.eup %1391 }
 0x12d   :  { %v454_v2 = vpack.c.bf16 %v1390_v0, %v1392_v1  ;;  %v1394_v3 = vpop.eup %1393 }
 0x12e   :  { %1221 = vmatpush3.bf16.msra.mxu1 %v456_v59  ;;  %v1396_v4 = vpop.eup %1395 }
 0x12f   :  { %1222 = vmatprep.subr.bf16.mxu1 %v455_v63  ;;  %v453_v5 = vpack.c.bf16 %v1394_v3, %v1396_v4  ;;  %v1398_v8 = vpop.eup %1397 }
 0x130   :  { %v1400_v6 = vpop.eup %1399 }
 0x131   :  { %v452_v10 = vpack.c.bf16 %v1398_v8, %v1400_v6 }
 0x132   :  { %1223 = vmatpush3.bf16.msra.mxu1 %v455_v63 }
 0x133   :  { %1224 = vmatprep.subr.bf16.mxu1 %v454_v2 }
 0x135   :  { %v1402_v12 = vpop.eup %1401 }
 0x136   :  { %1225 = vmatpush3.bf16.msra.mxu1 %v454_v2  ;;  %v498_v2 = vpop.permute.xlu0 %497 }
 0x137   :  { %1226 = vmatprep.subr.bf16.mxu1 %v453_v5  ;;  %v1404_v13 = vpop.eup %1403 }
 0x138   :  { %v451_v15 = vpack.c.bf16 %v1402_v12, %v1404_v13 }
 0x13a   :  { %1227 = vmatpush3.bf16.msra.mxu1 %v453_v5 }
 0x13b   :  { %1228 = vmatprep.subr.bf16.mxu1 %v452_v10 }
 0x13e   :  { %1229 = vmatpush3.bf16.msra.mxu1 %v452_v10  ;;  %v493_v10 = vpop.permute.xlu1 %492 }
 0x13f   :  { %1230 = vmatprep.subr.bf16.mxu1 %v451_v15 }
 0x142   :  { %1231 = vmatpush3.bf16.msra.mxu1 %v451_v15  ;;  %v488_v15 = vpop.permute.xlu0 %487 }
 0x145   :  { %1233 = vmatmul.mubr.bf16.vlgmr.msra.gmra.mxu1 %v1325_v9 }
 0x146   :  { %1236 = vmatprep.mubr.bf16.mxu1 %v1326_v16 }
 0x14d   :  { %1237 = vmatmul.mubr.bf16.gmra.mxu1 %v1327_v14 }
 0x14e   :  { %1240 = vmatprep.mubr.bf16.mxu1 %v1328_v17 }
 0x155   :  { %1241 = vmatmul.mubr.bf16.gmra.mxu1 %v1329_v18 }
 0x156   :  { %1244 = vmatprep.mubr.bf16.mxu1 %v1330_v19  ;;  %v483_v19 = vpop.permute.xlu1 %482 }
 0x15d   :  { %1245 = vmatmul.mubr.bf16.gmra.mxu1 %v1331_v20 }
 0x205   :  { %v1722_v22 = vpop.f32.mrf.mxu1 }
 0x206   :  { %v646_v17 = vadd.f32 %v1722_v22, %v488_v15  ;;  %v1333_v22 = vld [vmem:[%s1781_s5 + $0x8] sm:$0xff]  }
 0x207   :  { %v1724_v23 = vpop.f32.mrf.mxu1 }
 0x209   :  { %v1235_v24 = vpop.f32.mrf.mxu1 }
 0x20a   :  { %v649_v9 = vadd.f32 %v1235_v24, %v493_v10 }
 0x20b   :  { %v1726_v25 = vpop.f32.mrf.mxu1 }
 0x20c   :  { %v703_v20 = vmax.f32 %v649_v9, 0.0  ;;  %v641_v21 = vadd.f32 %v1726_v25, %v483_v19  ;;  %v1334_v25 = vld [vmem:[%s1781_s5 + $0x10] sm:$0xff]  }
 0x20d   :  { %v1238_v26 = vpop.f32.mrf.mxu1 }
 0x20e   :  { %v662_v3 = vadd.f32 %v1238_v26, %v508_v56  ;;  %v478_v26 = vpop.permute.xlu0 %477  ;;  %v701_v24 = vmax.f32 %v641_v21, 0.0 }
 0x20f   :  { %v653_v28 = vpop.f32.mrf.mxu1 }
 0x210   :  { %v706_v12 = vmax.f32 %v662_v3, 0.0  ;;  %v654_v13 = vadd.f32 %v653_v28, %v498_v2  ;;  %v638_v28 = vadd.f32 %v1724_v23, %v478_v26  ;;  %v1335_v23 = vld [vmem:[%s1781_s5 + $0x18] sm:$0xff]  }
 0x211   :  { %v1239_v7 = vpop.f32.mrf.mxu1 }
 0x212   :  { %v665_v63 = vadd.f32 %v1239_v7, %v513_v51  ;;  %v704_v18 = vmax.f32 %v654_v13, 0.0 }
 0x213   :  { %v656_v30 = vpop.f32.mrf.mxu1 }
 0x214   :  { %v707_v5 = vmax.f32 %v665_v63, 0.0  ;;  %v657_v8 = vadd.f32 %v656_v30, %v503_v62 }
 0x215   :  { %v1242_v32 = vpop.f32.mrf.mxu1 }
 0x216   :  { %v678_v52 = vadd.f32 %v1242_v32, %v528_v36  ;;  %v735_v16 = vpack.c.bf16 %v707_v5, %v706_v12  ;;  %v705_v14 = vmax.f32 %v657_v8, 0.0  ;;  %v1337_v32 = vld [vmem:[%s1781_s5 + $0x28] sm:$0xff]  }
 0x217   :  { %v669_v33 = vpop.f32.mrf.mxu1 }
 0x218   :  { %v710_v60 = vmax.f32 %v678_v52, 0.0  ;;  %v670_v61 = vadd.f32 %v669_v33, %v518_v42  ;;  %v1338_v33 = vld [vmem:[%s1781_s5 + $0x30] sm:$0xff]  }
 0x219   :  { %v1243_v35 = vpop.f32.mrf.mxu1 }
 0x21a   :  { %v681_v47 = vadd.f32 %v1243_v35, %v533_v34  ;;  %v708_v4 = vmax.f32 %v670_v61, 0.0  ;;  %v1339_v34 = vld [vmem:[%s1781_s5 + $0x38] sm:$0xff]   ;;  %v1436_v35 = vmov 0.0  }
 0x21b   :  { %v672_v37 = vpop.f32.mrf.mxu1  ;;  %1280 = vmatprep.subr.bf16.mxu1 %v1436_v35  ;;  %1296 = vmatprep.mubr.msk.bf16.mxu1 %vm1437_vm0, %v1436_v35 }
 0x21c   :  { %v711_v57 = vmax.f32 %v681_v47, 0.0  ;;  %v673_v58 = vadd.f32 %v672_v37, %v523_v39 }
 0x21d   :  { %v1246_v38 = vpop.f32.mrf.mxu1 }
 0x21e   :  { %v694_v41 = vadd.f32 %v1246_v38, %v548_v27  ;;  %v737_v0 = vpack.c.bf16 %v711_v57, %v710_v60  ;;  %v709_v1 = vmax.f32 %v673_v58, 0.0  ;;  %v702_v27 = vmax.f32 %v646_v17, 0.0 }
 0x21f   :  { %v685_v40 = vpop.f32.mrf.mxu1 }
 0x220   :  { %v686_v44 = vadd.f32 %v685_v40, %v538_v31  ;;  %v714_v48 = vmax.f32 %v694_v41, 0.0  ;;  %v736_v6 = vpack.c.bf16 %v709_v1, %v708_v4  ;;  %v733_v7 = vpack.c.bf16 %v703_v20, %v702_v27  ;;  %v1336_v31 = vld [vmem:[%s1781_s5 + $0x20] sm:$0xff]   ;;  %v834_v41 = vpop.permute.xlu1 %833 }
 0x221   :  { %v1247_v43 = vpop.f32.mrf.mxu1 }
 0x222   :  { %v697_v45 = vadd.f32 %v1247_v43, %v553_v11  ;;  %v712_v53 = vmax.f32 %v686_v44, 0.0  ;;  %v734_v11 = vpack.c.bf16 %v705_v14, %v704_v18  ;;  %v829_v43 = vpop.permute.xlu0 %828 }
 0x223   :  { %v688_v46 = vpop.f32.mrf.mxu1 }
 0x224   :  { %v715_v49 = vmax.f32 %v697_v45, 0.0  ;;  %v689_v50 = vadd.f32 %v688_v46, %v543_v29  ;;  %v700_v29 = vmax.f32 %v638_v28, 0.0  ;;  %v824_v46 = vpop.permute.xlu1 %823 }
 0x226   :  { %v739_v54 = vpack.c.bf16 %v715_v49, %v714_v48  ;;  %v713_v55 = vmax.f32 %v689_v50, 0.0  ;;  %v732_v30 = vpack.c.bf16 %v701_v24, %v700_v29  ;;  %v819_v48 = vpop.permute.xlu0 %818 }
 0x228   :  { %v738_v59 = vpack.c.bf16 %v713_v55, %v712_v53  ;;  %1248 = vmatprep.subr.bf16.mxu0 %v739_v54  ;;  %v814_v51 = vpop.permute.xlu1 %813 }
 0x229   :  { %1249 = vmatpush3.bf16.msra.mxu0 %v739_v54 }
 0x22a   :  { %1250 = vmatprep.subr.bf16.mxu0 %v738_v59  ;;  %v809_v53 = vpop.permute.xlu0 %808 }
 0x22c   :  { %v804_v57 = vpop.permute.xlu1 %803 }
 0x22d   :  { %1251 = vmatpush3.bf16.msra.mxu0 %v738_v59 }
 0x22e   :  { %1252 = vmatprep.subr.bf16.mxu0 %v737_v0  ;;  %v799_v60 = vpop.permute.xlu0 %798 }
 0x230   :  { %v794_v5 = vpop.permute.xlu1 %793 }
 0x231   :  { %1253 = vmatpush3.bf16.msra.mxu0 %v737_v0 }
 0x232   :  { %1254 = vmatprep.subr.bf16.mxu0 %v736_v6  ;;  %v789_v10 = vpop.permute.xlu0 %788 }
 0x234   :  { %v784_v14 = vpop.permute.xlu1 %783 }
 0x235   :  { %1255 = vmatpush3.bf16.msra.mxu0 %v736_v6 }
 0x236   :  { %1256 = vmatprep.subr.bf16.mxu0 %v735_v16  ;;  %v779_v20 = vpop.permute.xlu0 %778 }
 0x239   :  { %1257 = vmatpush3.bf16.msra.mxu0 %v735_v16 }
 0x23a   :  { %1258 = vmatprep.subr.bf16.mxu0 %v734_v11 }
 0x23d   :  { %1259 = vmatpush3.bf16.msra.mxu0 %v734_v11 }
 0x23e   :  { %1260 = vmatprep.subr.bf16.mxu0 %v733_v7 }
 0x241   :  { %1261 = vmatpush3.bf16.msra.mxu0 %v733_v7  ;;  %v774_v7 = vpop.permute.xlu1 %773 }
 0x242   :  { %1262 = vmatprep.subr.bf16.mxu0 %v732_v30 }
 0x245   :  { %1263 = vmatpush3.bf16.msra.mxu0 %v732_v30  ;;  %v769_v30 = vpop.permute.xlu0 %768 }
 0x248   :  { %1265 = vmatmul.mubr.bf16.vlgmr.msra.gmra.mxu0 %v1333_v22 }
 0x249   :  { %1268 = vmatprep.mubr.bf16.mxu0 %v1334_v25 }
 0x250   :  { %1269 = vmatmul.mubr.bf16.gmra.mxu0 %v1335_v23 }
 0x251   :  { %1272 = vmatprep.mubr.bf16.mxu0 %v1336_v31 }
 0x258   :  { %1273 = vmatmul.mubr.bf16.gmra.mxu0 %v1337_v32 }
 0x259   :  { %1276 = vmatprep.mubr.bf16.mxu0 %v1338_v33  ;;  %v764_v33 = vpop.permute.xlu1 %763 }
 0x260   :  { %1277 = vmatmul.mubr.bf16.gmra.mxu0 %v1339_v34 }
 0x308   :  { %v1754_v36 = vpop.f32.mrf.mxu0 }
 0x309   :  { %v927_v31 = vadd.f32 %v1754_v36, %v769_v30 }
 0x30a   :  { %v1756_v37 = vpop.f32.mrf.mxu0 }
 0x30c   :  { %v1267_v38 = vpop.f32.mrf.mxu0 }
 0x30d   :  { %v930_v22 = vadd.f32 %v1267_v38, %v774_v7 }
 0x30e   :  { %v1758_v39 = vpop.f32.mrf.mxu0 }
 0x30f   :  { %v984_v34 = vmax.f32 %v930_v22, 0.0 }
 0x310   :  { %v1270_v40 = vpop.f32.mrf.mxu0 }
 0x311   :  { %v943_v21 = vadd.f32 %v1270_v40, %v789_v10  ;;  %v922_v40 = vadd.f32 %v1758_v39, %v764_v33 }
 0x312   :  { %v934_v42 = vpop.f32.mrf.mxu0 }
 0x313   :  { %v987_v24 = vmax.f32 %v943_v21, 0.0  ;;  %v935_v29 = vadd.f32 %v934_v42, %v779_v20  ;;  %v983_v42 = vmax.f32 %v927_v31, 0.0 }
 0x314   :  { %v1271_v44 = vpop.f32.mrf.mxu0 }
 0x315   :  { %v946_v17 = vadd.f32 %v1271_v44, %v794_v5  ;;  %v985_v32 = vmax.f32 %v935_v29, 0.0  ;;  %v1000_v38 = vpack.c.bf16 %v984_v34, %v983_v42 }
 0x316   :  { %v937_v45 = vpop.f32.mrf.mxu0 }
 0x317   :  { %v988_v26 = vmax.f32 %v946_v17, 0.0  ;;  %v938_v27 = vadd.f32 %v937_v45, %v784_v14  ;;  %v982_v45 = vmax.f32 %v922_v40, 0.0 }
 0x318   :  { %v1274_v47 = vpop.f32.mrf.mxu0 }
 0x319   :  { %v959_v8 = vadd.f32 %v1274_v47, %v809_v53  ;;  %v1002_v25 = vpack.c.bf16 %v988_v26, %v987_v24  ;;  %v986_v23 = vmax.f32 %v938_v27, 0.0  ;;  %v1340_v47 = vld [vmem:[%s1783_s7] sm:$0xff]   ;;  %s1438_s7 = smov [#allocation2]  }
 0x31a   :  { %v950_v49 = vpop.f32.mrf.mxu0  ;;  %s1083_s2 = sshll.u32 %s1438_s7, 4  ;;  %s1084_s2 = int_to_ptr.vmem [resolvable:$true] %s1083_s2 }
 0x31b   :  { %v991_v9 = vmax.f32 %v959_v8, 0.0  ;;  %v951_v16 = vadd.f32 %v950_v49, %v799_v60  ;;  %s1413_s28 = scalar_lea.vmem %s1084_s2, 256  ;;  %p1418_p1 = scmp.lt.s32.totalorder %s1084_s2, %s1084_s2 }
 0x31c   :  { %v1275_v50 = vpop.f32.mrf.mxu0  ;;  %p1414_p0 = scmp.ne.s32.totalorder %s1084_s2, %s1413_s28  ;;  %p1419_p2 = scmp.lt.s32.totalorder %s1413_s28, %s1413_s28 }
 0x31d   :  { %v962_v2 = vadd.f32 %v1275_v50, %v814_v51  ;;  %v989_v11 = vmax.f32 %v951_v16, 0.0  ;;  %v1017_v51 = vpop.permute.xlu1 %1016 }
 0x31e   :  { %v953_v52 = vpop.f32.mrf.mxu0  ;;  %p1420_p3 = por %p1419_p2, %p1418_p1 }
 0x31f   :  { %v992_v12 = vmax.f32 %v962_v2, 0.0  ;;  %v954_v13 = vadd.f32 %v953_v52, %v804_v57 }
 0x320   :  { %v1278_v54 = vpop.f32.mrf.mxu0  ;;  %p1421_p4 = pnand %p1420_p3, %p1414_p0 }
 0x321   :  { %v975_v56 = vadd.f32 %v1278_v54, %v829_v43  ;;  %v1004_v18 = vpack.c.bf16 %v992_v12, %v991_v9  ;;  %v990_v19 = vmax.f32 %v954_v13, 0.0  ;;  %v759_v43 = vpop.permute.xlu0 %758 }
 0x322   :  { %v966_v55 = vpop.f32.mrf.mxu0  ;;  %v919_v44 = vadd.f32 %v1756_v37, %v759_v43 }
 0x323   :  { %v995_v62 = vmax.f32 %v975_v56, 0.0  ;;  %v967_v63 = vadd.f32 %v966_v55, %v819_v48  ;;  %v1003_v28 = vpack.c.bf16 %v990_v19, %v989_v11 }
 0x324   :  { %v1279_v58 = vpop.f32.mrf.mxu0 }
 0x325   :  { %v978_v59 = vadd.f32 %v1279_v58, %v834_v41  ;;  %v993_v6 = vmax.f32 %v967_v63, 0.0  ;;  %v1001_v41 = vpack.c.bf16 %v986_v23, %v985_v32  ;;  %v1012_v39 = vpop.permute.xlu0 %1011 }
 0x326   :  { %v969_v61 = vpop.f32.mrf.mxu0 }
 0x327   :  { %v996_v0 = vmax.f32 %v978_v59, 0.0  ;;  %v970_v1 = vadd.f32 %v969_v61, %v824_v46  ;;  %v981_v46 = vmax.f32 %v919_v44, 0.0 }
 0x329   :  { %v1006_v3 = vpack.c.bf16 %v996_v0, %v995_v62  ;;  %v994_v4 = vmax.f32 %v970_v1, 0.0  ;;  %v999_v36 = vpack.c.bf16 %v982_v45, %v981_v46 }
 0x32b   :  { %1281 = vmatpush3.bf16.msra.mxu1 %v1006_v3  ;;  %v1005_v15 = vpack.c.bf16 %v994_v4, %v993_v6 }
 0x32c   :  { %1282 = vmatprep.subr.bf16.mxu1 %v1436_v35 }
 0x32f   :  { %1283 = vmatpush3.bf16.msra.mxu1 %v1005_v15 }
 0x330   :  { %1284 = vmatprep.subr.bf16.mxu1 %v1436_v35 }
 0x333   :  { %1285 = vmatpush3.bf16.msra.mxu1 %v1004_v18 }
 0x334   :  { %1286 = vmatprep.subr.bf16.mxu1 %v1436_v35 }
 0x337   :  { %1287 = vmatpush3.bf16.msra.mxu1 %v1003_v28 }
 0x338   :  { %1288 = vmatprep.subr.bf16.mxu1 %v1436_v35 }
 0x33b   :  { %1289 = vmatpush3.bf16.msra.mxu1 %v1002_v25 }
 0x33c   :  { %1290 = vmatprep.subr.bf16.mxu1 %v1436_v35 }
 0x33f   :  { %1291 = vmatpush3.bf16.msra.mxu1 %v1001_v41 }
 0x340   :  { %1292 = vmatprep.subr.bf16.mxu1 %v1436_v35 }
 0x343   :  { %1293 = vmatpush3.bf16.msra.mxu1 %v1000_v38 }
 0x344   :  { %1294 = vmatprep.subr.bf16.mxu1 %v1436_v35 }
 0x347   :  { %1295 = vmatpush3.bf16.msra.mxu1 %v999_v36 }
 0x34a   :  { %1297 = vmatmul.mubr.bf16.vlgmr.msra.gmra.mxu1 %v1340_v47 }
 0x40a   :  { %v1059_v48 = vpop.f32.mrf.mxu1 }
 0x40b   :  { %v1060_v49 = vadd.f32 %v1059_v48, %v1012_v39 }
 0x40c   :  { %v1298_v37 = vpop.f32.mrf.mxu1 }
 0x40d   :  { %v1066_v50 = vsub.f32 0.0, %v1060_v49 }
 0x40e   :  { %v1062_v52 = vpop.f32.mrf.mxu1 }
 0x40f   :  { %v1068_v53 = vmul.f32 1.442695, %v1066_v50  ;;  %v1063_v54 = vadd.f32 %v1062_v52, %v1017_v51 }
 0x410   :  { %v1299_v55 = vpop.f32.mrf.mxu1 }
 0x411   :  { %1405 = vpow2.f32 %v1068_v53  ;;  %v1067_v56 = vsub.f32 0.0, %v1063_v54 }
 0x413   :  { %v1070_v35 = vmul.f32 1.442695, %v1067_v56 }
 0x415   :  { %1407 = vpow2.f32 %v1070_v35 }
 0x41e   :  { %v1406_v57 = vpop.eup %1405 }
 0x41f   :  { %v1072_v58 = vadd.f32 1.0, %v1406_v57 }
 0x421   :  { %1409 = vrcp.f32 %v1072_v58 }
 0x422   :  { %v1408_v59 = vpop.eup %1407 }
 0x423   :  { %v1073_v60 = vadd.f32 1.0, %v1408_v59 }
 0x425   :  { %1411 = vrcp.f32 %v1073_v60 }
 0x42e   :  { %v1410_v61 = vpop.eup %1409 }
 0x42f   :  { %1076 = vst [vmem:[#allocation2] sm:$0xff] %v1410_v61 }
 0x432   :  { %v1412_v62 = vpop.eup %1411 }
 0x433   :  { %1077 = vst [vmem:[#allocation2 + $0x8] sm:$0xff] %v1412_v62 }
 0x434   :  { %1424 = shalt.err (!%p1421_p4)
}
 0x435   :  { %s1439_s29 = smov 128   ;;  %s1440_s1 = smov 8  }
 0x436   :  { %1089 = dma.vmem_to_hbm [thread:$0]  %s1084_s2, 256, %s1785_s9, [#allocation3], %s1439_s29, %s1439_s29, %s1440_s1  }
 0x437   :  { %1433 = dma.done.wait [#allocation3], 256  }
 0x438   :  { %1434 = vsyncadd [#allocation3], 4294967040 }
 0x439   :  { %1093 = vsyncpa [#allocation3], 1 }

</bundles_post_ra>
